<compile_context>
chip_gen: v7x
topology: tpu7x:2x2x1
jax: 0.10.0
libtpu: 0.0.40
codegen_flags: <defaults>
</compile_context>

<pallas_src>
import math

import jax
import jax.numpy as jnp
from jax.experimental import pallas as pl
from jax.experimental.pallas import tpu as pltpu


# ----------------------------- config (small, synthetic) -----------------------------
HIDDEN_SIZE = 32                    # config.hidden_size
MLP_DIM = 64                        # config.transformer['mlp_dim']
IN_FEATURES = 3 * HIDDEN_SIZE       # fc1 input = 3 * hidden_size
OUT_FEATURES = 2                    # fc3 output
BATCH = 2

LANE = 128                          # TPU vreg lane width


def _round_up(x, m):
    return (x + m - 1) // m * m


IN_PAD = _round_up(IN_FEATURES, LANE)     # 96  -> 128
MLP_PAD = _round_up(MLP_DIM, LANE)        # 64  -> 128
HID_PAD = _round_up(HIDDEN_SIZE, LANE)    # 32  -> 128
OUT_PAD = _round_up(OUT_FEATURES, LANE)   # 2   -> 128 (lane-dense output store)

BATCH_TILE = 256                    # rows per grid step (multiple of 8 sublanes)


# ----------------------------- Pallas kernel -----------------------------------------
def _gelu_exact(x):
    # torch.nn.functional.gelu default = exact erf formulation (f32 math).
    return 0.5 * x * (1.0 + jax.lax.erf(x * (1.0 / math.sqrt(2.0))))


def mlp_kernel(x_ref, w1_ref, b1_ref, w2_ref, b2_ref, w3_ref, b3_ref, o_ref):
    # One (BATCH_TILE, 128) slab of rows; every operand is lane-dense (x128).
    x = x_ref[...]

    # fc1 + gelu   (dropout is identity at inference)
    h = jnp.dot(x, w1_ref[...], preferred_element_type=jnp.float32) + b1_ref[...]
    h = _gelu_exact(h)

    # fc2 + gelu
    h = jnp.dot(h.astype(w2_ref.dtype), w2_ref[...],
                preferred_element_type=jnp.float32) + b2_ref[...]
    h = _gelu_exact(h)

    # fc3
    y = jnp.dot(h.astype(w3_ref.dtype), w3_ref[...],
                preferred_element_type=jnp.float32) + b3_ref[...]
    o_ref[...] = y.astype(o_ref.dtype)


def fcn_forward(fcn_input, padded_params, *, batch_tile=BATCH_TILE,
                compute_dtype=jnp.float32):
    """fcn_input: (B, 1, 3*hidden_size) -> (B, 1, 2), matching Mlp.forward
    (inference: dropout = identity)."""
    w1, b1, w2, b2, w3, b3 = padded_params
    B = fcn_input.shape[0]
    x2d = fcn_input.reshape(B, IN_FEATURES)

    # Zero-pad features to a lane-dense 128 multiple and batch to a tile multiple.
    # Exact: padded input lanes hit zero weight rows, padded batch rows are sliced off.
    b_pad = batch_tile * pl.cdiv(B, batch_tile)
    x_pad = jnp.pad(x2d, ((0, b_pad - B), (0, IN_PAD - IN_FEATURES)))

    # Optional bf16 operand cast for the v6e/v7x MXU (f32 accumulation kept inside
    # the kernel).  Default f32 preserves torch numerics exactly.
    x_pad = x_pad.astype(compute_dtype)
    w1c, w2c, w3c = (w.astype(compute_dtype) for w in (w1, w2, w3))

    n_tiles = b_pad // batch_tile
    itemsize = jnp.dtype(compute_dtype).itemsize
    cost = pl.CostEstimate(
        flops=2 * b_pad * (IN_PAD * MLP_PAD + MLP_PAD * HID_PAD + HID_PAD * OUT_PAD),
        transcendentals=b_pad * (MLP_PAD + HID_PAD),   # one erf per gelu element
        bytes_accessed=(x_pad.size * itemsize
                        + (w1c.size + w2c.size + w3c.size) * itemsize
                        + (b1.size + b2.size + b3.size) * 4
                        + b_pad * OUT_PAD * 4),
    )

    # Weights / biases: constant index_map -> DMA'd once, VMEM-resident across the
    # batch grid.  x / out: tiled over batch -> auto double-buffered pipeline.
    resident = lambda shape: pl.BlockSpec(shape, lambda i: (0, 0))

    out_pad = pl.pallas_call(
        mlp_kernel,
        out_shape=jax.ShapeDtypeStruct((b_pad, OUT_PAD), jnp.float32),
        grid=(n_tiles,),
        in_specs=[
            pl.BlockSpec((batch_tile, IN_PAD), lambda i: (i, 0)),
            resident((IN_PAD, MLP_PAD)), resident((1, MLP_PAD)),
            resident((MLP_PAD, HID_PAD)), resident((1, HID_PAD)),
            resident((HID_PAD, OUT_PAD)), resident((1, OUT_PAD)),
        ],
        out_specs=pl.BlockSpec((batch_tile, OUT_PAD), lambda i: (i, 0)),
        compiler_params=pltpu.CompilerParams(
            dimension_semantics=("parallel",)),   # v7x megacore; no-op on v5e/v6e
        cost_estimate=cost,
    )(x_pad, w1c, b1, w2c, b2, w3c, b3)

    # Slice away padded batch rows and padded output lanes (kernel stored a
    # lane-dense (TB, 128) block; this slice is a cheap XLA op).
    return out_pad[:B, :OUT_FEATURES].reshape(B, 1, OUT_FEATURES)


# ----------------------------- deterministic parameter init --------------------------
def xavier_uniform(key, fan_in, fan_out, dtype=jnp.float32):
    # nn.init.xavier_uniform_ : U(-a, a), a = sqrt(6 / (fan_in + fan_out)).
    a = math.sqrt(6.0 / (fan_in + fan_out))
    # stored as (in, out) so the kernel does x @ W (== torch x @ W.T with W=(out,in))
    return jax.random.uniform(key, (fan_in, fan_out), dtype, minval=-a, maxval=a)


def init_mlp_params(key):
    k1, k2, k3, k4, k5, k6 = jax.random.split(key, 6)
    w1 = xavier_uniform(k1, IN_FEATURES, MLP_DIM)
    b1 = 1e-6 * jax.random.normal(k2, (1, MLP_DIM), jnp.float32)
    w2 = xavier_uniform(k3, MLP_DIM, HIDDEN_SIZE)
    b2 = 1e-6 * jax.random.normal(k4, (1, HIDDEN_SIZE), jnp.float32)
    w3 = xavier_uniform(k5, HIDDEN_SIZE, OUT_FEATURES)
    b3 = 1e-6 * jax.random.normal(k6, (1, OUT_FEATURES), jnp.float32)
    return (w1, b1, w2, b2, w3, b3)


def pad_params(params):
    """Zero-pad weights/biases to lane-dense (128-multiple) shapes, once, ahead of
    time.  Numerically exact: padded output lanes get zero weight cols + zero bias
    and gelu(0) == 0; padded input lanes hit zero weight rows."""
    w1, b1, w2, b2, w3, b3 = params
    pad2 = lambda a, r, c: jnp.pad(a, ((0, r - a.shape[0]), (0, c - a.shape[1])))
    return (pad2(w1, IN_PAD, MLP_PAD), pad2(b1, 1, MLP_PAD),
            pad2(w2, MLP_PAD, HID_PAD), pad2(b2, 1, HID_PAD),
            pad2(w3, HID_PAD, OUT_PAD), pad2(b3, 1, OUT_PAD))


# ----------------------------- module-level forward -----------------------------------
def nature_following_motion_estimator_forward(sc_out, eri_out, padded_params,
                                              compute_dtype=jnp.float32):
    """
    Mirrors the tail of NatureFollowingMotionEstimator.forward:
        FCN_input = cat((SC_out, ERI_out), dim=1).view(B, 1, -1)
        res = FCN(FCN_input)
    # TODO(synk): SCE / SME / BCA encoders (SCVT, SMVT, BiCrossA) source is not
    # provided; sc_out / eri_out stand in for the BCA outputs here.
    """
    fcn_input = jnp.concatenate((sc_out, eri_out), axis=1)   # cat along dim=1
    B = fcn_input.shape[0]
    fcn_input = fcn_input.reshape(B, 1, -1)                  # .view(B, 1, -1)
    return fcn_forward(fcn_input, padded_params, compute_dtype=compute_dtype)


if __name__ == "__main__":
    key = jax.random.PRNGKey(0)
    kp, ka, kb = jax.random.split(key, 3)

    params = init_mlp_params(kp)
    padded_params = pad_params(params)

    # Stand-ins for BCA outputs: SC_out (B, 2, hidden), ERI_out (B, 1, hidden)
    # so that cat along dim=1 then view gives (B, 1, 3*hidden_size).
    sc_out = jax.random.normal(ka, (BATCH, 2, HIDDEN_SIZE), jnp.float32)
    eri_out = jax.random.normal(kb, (BATCH, 1, HIDDEN_SIZE), jnp.float32)

    res = nature_following_motion_estimator_forward(sc_out, eri_out, padded_params)
    res = jax.block_until_ready(res)
    assert res.shape == (BATCH, 1, OUT_FEATURES), res.shape

    # Pure-JAX reference of the Mlp path (f32, exact erf gelu, unpadded params).
    w1, b1, w2, b2, w3, b3 = params
    x2d = jnp.concatenate((sc_out, eri_out), axis=1).reshape(BATCH, IN_FEATURES)
    g = lambda t: 0.5 * t * (1.0 + jax.lax.erf(t / jnp.sqrt(2.0)))
    ref = (g(g(x2d @ w1 + b1) @ w2 + b2) @ w3 + b3).reshape(BATCH, 1, OUT_FEATURES)
    assert jnp.allclose(res, ref, atol=1e-5, rtol=1e-5), \
        float(jnp.max(jnp.abs(res - ref)))

    print("KERNEL_OK")
</pallas_src>

<mosaic_0001>
module attributes {stable_mosaic.version = 11 : i64} {
  func.func @mlp_kernel(%arg0: i32, %arg1: memref<256x128xf32, #tpu.memory_space<vmem>>, %arg2: memref<128x128xf32, #tpu.memory_space<vmem>>, %arg3: memref<1x128xf32, #tpu.memory_space<vmem>>, %arg4: memref<128x128xf32, #tpu.memory_space<vmem>>, %arg5: memref<1x128xf32, #tpu.memory_space<vmem>>, %arg6: memref<128x128xf32, #tpu.memory_space<vmem>>, %arg7: memref<1x128xf32, #tpu.memory_space<vmem>>, %arg8: memref<256x128xf32, #tpu.memory_space<vmem>>) attributes {dimension_semantics = [#tpu.dimension_semantics<parallel>], iteration_bounds = array<i64: 1>, scalar_prefetch = 0 : i64, scratch_operands = 0 : i64, tpu.core_type = #tpu.core_type<tc>, window_params = [{transform_indices = @transform_0, window_bounds = array<i64: 256, 128>}, {pipeline_mode = #tpu.pipeline_mode<synchronous>, transform_indices = @transform_1, window_bounds = array<i64: 128, 128>}, {pipeline_mode = #tpu.pipeline_mode<synchronous>, transform_indices = @transform_2, window_bounds = array<i64: 1, 128>}, {pipeline_mode = #tpu.pipeline_mode<synchronous>, transform_indices = @transform_3, window_bounds = array<i64: 128, 128>}, {pipeline_mode = #tpu.pipeline_mode<synchronous>, transform_indices = @transform_4, window_bounds = array<i64: 1, 128>}, {pipeline_mode = #tpu.pipeline_mode<synchronous>, transform_indices = @transform_5, window_bounds = array<i64: 128, 128>}, {pipeline_mode = #tpu.pipeline_mode<synchronous>, transform_indices = @transform_6, window_bounds = array<i64: 1, 128>}, {transform_indices = @transform_7, window_bounds = array<i64: 256, 128>}]} {
    %c0 = arith.constant 0 : index
    %c0_0 = arith.constant 0 : index
    %0 = vector.load %arg1[%c0, %c0_0] : memref<256x128xf32, #tpu.memory_space<vmem>>, vector<256x128xf32>
    %c0_1 = arith.constant 0 : index
    %c0_2 = arith.constant 0 : index
    %1 = vector.load %arg2[%c0_1, %c0_2] : memref<128x128xf32, #tpu.memory_space<vmem>>, vector<128x128xf32>
    %cst = arith.constant dense<0.000000e+00> : vector<256x128xf32>
    %2 = tpu.matmul %0, %1, %cst {dimension_numbers = #tpu.dot_dimension_numbers<[1], [0], [0], [1], [0, 0, 1, 1], [], []>} : vector<256x128xf32>, vector<128x128xf32>, vector<256x128xf32> -> vector<256x128xf32>
    %c0_3 = arith.constant 0 : index
    %c0_4 = arith.constant 0 : index
    %3 = vector.load %arg3[%c0_3, %c0_4] : memref<1x128xf32, #tpu.memory_space<vmem>>, vector<1x128xf32>
    %4 = vector.broadcast %3 : vector<1x128xf32> to vector<256x128xf32>
    %5 = arith.addf %2, %4 : vector<256x128xf32>
    %cst_5 = arith.constant 5.000000e-01 : f32
    %6 = vector.broadcast %cst_5 : f32 to vector<256x128xf32>
    %7 = arith.mulf %6, %5 : vector<256x128xf32>
    %cst_6 = arith.constant 0.707106769 : f32
    %8 = vector.broadcast %cst_6 : f32 to vector<256x128xf32>
    %9 = arith.mulf %5, %8 : vector<256x128xf32>
    %10 = math.erf %9 : vector<256x128xf32>
    %cst_7 = arith.constant 1.000000e+00 : f32
    %11 = vector.broadcast %cst_7 : f32 to vector<256x128xf32>
    %12 = arith.addf %11, %10 : vector<256x128xf32>
    %13 = arith.mulf %7, %12 : vector<256x128xf32>
    %c0_8 = arith.constant 0 : index
    %c0_9 = arith.constant 0 : index
    %14 = vector.load %arg4[%c0_8, %c0_9] : memref<128x128xf32, #tpu.memory_space<vmem>>, vector<128x128xf32>
    %cst_10 = arith.constant dense<0.000000e+00> : vector<256x128xf32>
    %15 = tpu.matmul %13, %14, %cst_10 {dimension_numbers = #tpu.dot_dimension_numbers<[1], [0], [0], [1], [0, 0, 1, 1], [], []>} : vector<256x128xf32>, vector<128x128xf32>, vector<256x128xf32> -> vector<256x128xf32>
    %c0_11 = arith.constant 0 : index
    %c0_12 = arith.constant 0 : index
    %16 = vector.load %arg5[%c0_11, %c0_12] : memref<1x128xf32, #tpu.memory_space<vmem>>, vector<1x128xf32>
    %17 = vector.broadcast %16 : vector<1x128xf32> to vector<256x128xf32>
    %18 = arith.addf %15, %17 : vector<256x128xf32>
    %cst_13 = arith.constant 5.000000e-01 : f32
    %19 = vector.broadcast %cst_13 : f32 to vector<256x128xf32>
    %20 = arith.mulf %19, %18 : vector<256x128xf32>
    %cst_14 = arith.constant 0.707106769 : f32
    %21 = vector.broadcast %cst_14 : f32 to vector<256x128xf32>
    %22 = arith.mulf %18, %21 : vector<256x128xf32>
    %23 = math.erf %22 : vector<256x128xf32>
    %cst_15 = arith.constant 1.000000e+00 : f32
    %24 = vector.broadcast %cst_15 : f32 to vector<256x128xf32>
    %25 = arith.addf %24, %23 : vector<256x128xf32>
    %26 = arith.mulf %20, %25 : vector<256x128xf32>
    %c0_16 = arith.constant 0 : index
    %c0_17 = arith.constant 0 : index
    %27 = vector.load %arg6[%c0_16, %c0_17] : memref<128x128xf32, #tpu.memory_space<vmem>>, vector<128x128xf32>
    %cst_18 = arith.constant dense<0.000000e+00> : vector<256x128xf32>
    %28 = tpu.matmul %26, %27, %cst_18 {dimension_numbers = #tpu.dot_dimension_numbers<[1], [0], [0], [1], [0, 0, 1, 1], [], []>} : vector<256x128xf32>, vector<128x128xf32>, vector<256x128xf32> -> vector<256x128xf32>
    %c0_19 = arith.constant 0 : index
    %c0_20 = arith.constant 0 : index
    %29 = vector.load %arg7[%c0_19, %c0_20] : memref<1x128xf32, #tpu.memory_space<vmem>>, vector<1x128xf32>
    %30 = vector.broadcast %29 : vector<1x128xf32> to vector<256x128xf32>
    %31 = arith.addf %28, %30 : vector<256x128xf32>
    %c0_21 = arith.constant 0 : index
    %c0_22 = arith.constant 0 : index
    %32 = vector.load %arg8[%c0_21, %c0_22] : memref<256x128xf32, #tpu.memory_space<vmem>>, vector<256x128xf32>
    tpu.vector_store %arg8[%c0_21, %c0_22], %31 {strides = array<i32>} : memref<256x128xf32, #tpu.memory_space<vmem>>, vector<256x128xf32>,
    return
  }
  func.func @transform_0(%arg0: i32) -> (i32, i32) {
    %c0_i32 = arith.constant 0 : i32
    %c0_i32_0 = arith.constant 0 : i32
    return %arg0, %c0_i32 : i32, i32
  }
  func.func @transform_1(%arg0: i32) -> (i32, i32) {
    %c0_i32 = arith.constant 0 : i32
    %c0_i32_0 = arith.constant 0 : i32
    %c0_i32_1 = arith.constant 0 : i32
    return %c0_i32, %c0_i32_0 : i32, i32
  }
  func.func @transform_2(%arg0: i32) -> (i32, i32) {
    %c0_i32 = arith.constant 0 : i32
    %c0_i32_0 = arith.constant 0 : i32
    %c0_i32_1 = arith.constant 0 : i32
    return %c0_i32, %c0_i32_0 : i32, i32
  }
  func.func @transform_3(%arg0: i32) -> (i32, i32) {
    %c0_i32 = arith.constant 0 : i32
    %c0_i32_0 = arith.constant 0 : i32
    %c0_i32_1 = arith.constant 0 : i32
    return %c0_i32, %c0_i32_0 : i32, i32
  }
  func.func @transform_4(%arg0: i32) -> (i32, i32) {
    %c0_i32 = arith.constant 0 : i32
    %c0_i32_0 = arith.constant 0 : i32
    %c0_i32_1 = arith.constant 0 : i32
    return %c0_i32, %c0_i32_0 : i32, i32
  }
  func.func @transform_5(%arg0: i32) -> (i32, i32) {
    %c0_i32 = arith.constant 0 : i32
    %c0_i32_0 = arith.constant 0 : i32
    %c0_i32_1 = arith.constant 0 : i32
    return %c0_i32, %c0_i32_0 : i32, i32
  }
  func.func @transform_6(%arg0: i32) -> (i32, i32) {
    %c0_i32 = arith.constant 0 : i32
    %c0_i32_0 = arith.constant 0 : i32
    %c0_i32_1 = arith.constant 0 : i32
    return %c0_i32, %c0_i32_0 : i32, i32
  }
  func.func @transform_7(%arg0: i32) -> (i32, i32) {
    %c0_i32 = arith.constant 0 : i32
    %c0_i32_0 = arith.constant 0 : i32
    return %arg0, %c0_i32 : i32, i32
  }
}

</mosaic_0001>

<bundles_post_ra>
// kernel: tpu_custom_call.1
= control target key start
LH: loop header
LB: loop body
LE: loop exit
PB: predicated region body
PF: predicated region fallthrough
CT: control target
= control target key end

     0   :  { %12 = vsyncpa [#allocation3], 0  ;;  %s2449_s0 = inlined_call_operand.hbm [shape: f32[256,128], index: 0, kind: input, shape index: {}]   ;;  %s2450_s1 = inlined_call_operand.hbm [shape: f32[128,128], index: 1, kind: input, shape index: {}]   ;;  %s2451_s2 = inlined_call_operand.vmem [shape: f32[1,128], index: 2, kind: input, shape index: {}]   ;;  %s2452_s3 = inlined_call_operand.hbm [shape: f32[128,128], index: 3, kind: input, shape index: {}]   ;;  %s2453_s4 = inlined_call_operand.vmem [shape: f32[1,128], index: 4, kind: input, shape index: {}]   ;;  %s2454_s5 = inlined_call_operand.hbm [shape: f32[128,128], index: 5, kind: input, shape index: {}]   ;;  %s2455_s6 = inlined_call_operand.vmem [shape: f32[1,128], index: 6, kind: input, shape index: {}]   ;;  %s2456_s7 = inlined_call_operand.hbm [shape: f32[256,128], index: 7, kind: output, shape index: {}]  }
   0x1   :  { %13 = vsyncpa [#allocation6], 0 }
   0x2   :  { %14 = vsyncpa [#allocation9], 0 }
   0x3   :  { %15 = vsyncpa [#allocation4], 0  ;;  %s1981_s24 = smov [#allocation5]   ;;  %s1982_s26 = smov [#allocation2]  }
   0x4   :  { %s33_s25 = sshll.u32 %s1981_s24, 4  ;;  %s21_s27 = sshll.u32 %s1982_s26, 4  ;;  %s34_s25 = int_to_ptr.vmem [resolvable:$true] %s33_s25  ;;  %s2028_s27 = int_to_ptr.vmem [resolvable:$true] %s21_s27 }
   0x5   :  { %s1863_s30 = scalar_lea.hbm %s2450_s1, 2048 }
   0x6   :  { %p1864_p0 = scmp.ne.s32.totalorder %s2450_s1, %s1863_s30  ;;  %p1867_p1 = scmp.lt.u32.totalorder %s1863_s30, %s2450_s1 }
   0x8   :  { %p1869_p2 = pnand %p1867_p1, %p1864_p0 }
   0xa   :  { %1872 = shalt.err (!%p1869_p2)
}
   0xb   :  { %s1873_s12 = scalar_lea.vmem %s34_s25, 2048  ;;  %p1878_p4 = scmp.lt.s32.totalorder %s34_s25, %s34_s25 }
   0xc   :  { %p1874_p3 = scmp.ne.s32.totalorder %s34_s25, %s1873_s12  ;;  %p1879_p5 = scmp.lt.s32.totalorder %s1873_s12, %s1873_s12 }
   0xe   :  { %p1880_p6 = por %p1879_p5, %p1878_p4 }
  0x10   :  { %p1881_p7 = pnand %p1880_p6, %p1874_p3 }
  0x12   :  { %1884 = shalt.err (!%p1881_p7)
}
  0x13   :  { %s1983_s13 = smov 128   ;;  %s1984_s14 = smov 8  }
  0x14   :  { %39 = dma.hbm_to_vmem [thread:$0]  %s2450_s1, 2048, %s34_s25, [#allocation6], %s1983_s13, %s1983_s13, %s1984_s14  }
  0x15   :  { %s1885_s19 = scalar_lea.hbm %s2449_s0, 4096 }
  0x16   :  { %p1886_p8 = scmp.ne.s32.totalorder %s2449_s0, %s1885_s19  ;;  %p1889_p9 = scmp.lt.u32.totalorder %s1885_s19, %s2449_s0 }
  0x18   :  { %p1891_p10 = pnand %p1889_p9, %p1886_p8 }
  0x1a   :  { %1894 = shalt.err (!%p1891_p10)
}
  0x1b   :  { %s1895_s24 = scalar_lea.vmem %s2028_s27, 4096  ;;  %p1900_p12 = scmp.lt.s32.totalorder %s2028_s27, %s2028_s27 }
  0x1c   :  { %p1896_p11 = scmp.ne.s32.totalorder %s2028_s27, %s1895_s24  ;;  %p1901_p13 = scmp.lt.s32.totalorder %s1895_s24, %s1895_s24 }
  0x1e   :  { %p1902_p0 = por %p1901_p13, %p1900_p12 }
  0x20   :  { %p1903_p1 = pnand %p1902_p0, %p1896_p11 }
  0x22   :  { %1906 = shalt.err (!%p1903_p1)
}
  0x23   :  { %27 = dma.hbm_to_vmem [thread:$0]  %s2449_s0, 4096, %s2028_s27, [#allocation3], %s1983_s13, %s1983_s13, %s1984_s14  }
  0x24   :  { %s1985_s26 = smov [#allocation7]   ;;  %s1986_s29 = smov [#allocation8]  }
  0x25   :  { %s47_s28 = sshll.u32 %s1985_s26, 4  ;;  %s61_s30 = sshll.u32 %s1986_s29, 4  ;;  %s48_s28 = int_to_ptr.vmem [resolvable:$true] %s47_s28  ;;  %s2065_s30 = int_to_ptr.vmem [resolvable:$true] %s61_s30 }
  0x26   :  { %s1907_s10 = scalar_lea.hbm %s2452_s3, 2048 }
  0x27   :  { %p1908_p2 = scmp.ne.s32.totalorder %s2452_s3, %s1907_s10  ;;  %p1911_p3 = scmp.lt.u32.totalorder %s1907_s10, %s2452_s3 }
  0x29   :  { %p1913_p4 = pnand %p1911_p3, %p1908_p2 }
  0x2b   :  { %1916 = shalt.err (!%p1913_p4)
}
  0x2c   :  { %s1917_s0 = scalar_lea.vmem %s48_s28, 2048  ;;  %p1922_p6 = scmp.lt.s32.totalorder %s48_s28, %s48_s28 }
  0x2d   :  { %p1918_p5 = scmp.ne.s32.totalorder %s48_s28, %s1917_s0  ;;  %p1923_p7 = scmp.lt.s32.totalorder %s1917_s0, %s1917_s0 }
  0x2f   :  { %p1924_p8 = por %p1923_p7, %p1922_p6 }
  0x31   :  { %p1925_p9 = pnand %p1924_p8, %p1918_p5 }
  0x33   :  { %1928 = shalt.err (!%p1925_p9)
}
  0x34   :  { %53 = dma.hbm_to_vmem [thread:$0]  %s2452_s3, 2048, %s48_s28, [#allocation6], %s1983_s13, %s1983_s13, %s1984_s14  }
  0x35   :  { %s1929_s20 = scalar_lea.hbm %s2454_s5, 2048 }
  0x36   :  { %p1930_p10 = scmp.ne.s32.totalorder %s2454_s5, %s1929_s20  ;;  %p1933_p11 = scmp.lt.u32.totalorder %s1929_s20, %s2454_s5 }
  0x38   :  { %p1935_p12 = pnand %p1933_p11, %p1930_p10 }
  0x3a   :  { %1938 = shalt.err (!%p1935_p12)
}
  0x3b   :  { %s1939_s1 = scalar_lea.vmem %s2065_s30, 2048  ;;  %p1944_p0 = scmp.lt.s32.totalorder %s2065_s30, %s2065_s30 }
  0x3c   :  { %p1940_p13 = scmp.ne.s32.totalorder %s2065_s30, %s1939_s1  ;;  %p1945_p1 = scmp.lt.s32.totalorder %s1939_s1, %s1939_s1 }
  0x3e   :  { %p1946_p2 = por %p1945_p1, %p1944_p0 }
  0x40   :  { %p1947_p3 = pnand %p1946_p2, %p1940_p13 }
  0x42   :  { %1950 = shalt.err (!%p1947_p3)
}
  0x43   :  { %67 = dma.hbm_to_vmem [thread:$0]  %s2454_s5, 2048, %s2065_s30, [#allocation9], %s1983_s13, %s1983_s13, %s1984_s14  }
  0x44   :  { %1973 = dma.done.wait [#allocation3], 4096  }
  0x45   :  { %1974 = vsyncadd [#allocation3], 4294963200 }
  0x46   :  { %1975 = dma.done.wait [#allocation6], 4096  }
  0x47   :  { %1976 = vsyncadd [#allocation6], 4294963200 }
  0x48   :  { %1977 = dma.done.wait [#allocation9], 2048  }
  0x49   :  { %1978 = vsyncadd [#allocation9], 4294965248  ;;  %v114_v0 = vld [vmem:[#allocation5] sm:$0xff]  ;;  %v115_v1 = vld [vmem:[#allocation5 + $0x8] sm:$0xff] }
  0x4a   :  { %v116_v2 = vld [vmem:[#allocation5 + $0x10] sm:$0xff]  ;;  %v1616_v3 = vpack.c.bf16 %v115_v1, %v114_v0  ;;  %v117_v4 = vld [vmem:[#allocation5 + $0x18] sm:$0xff]  ;;  %v118_v6 = vld [vmem:[#allocation5 + $0x20] sm:$0xff] }
  0x4b   :  { %v1620_v5 = vpack.c.bf16 %v117_v4, %v116_v2  ;;  %v119_v7 = vld [vmem:[#allocation5 + $0x28] sm:$0xff]  ;;  %v82_v9 = vld [vmem:[#allocation2] sm:$0xff]  ;;  %v120_v10 = vld [vmem:[#allocation5 + $0x30] sm:$0xff] }
  0x4c   :  { %1617 = vmatprep.subr.bf16.mxu0 %v1616_v3  ;;  %1712 = vmatprep.subr.bf16.mxu1 %v1616_v3  ;;  %v1624_v8 = vpack.c.bf16 %v119_v7, %v118_v6  ;;  %v121_v11 = vld [vmem:[#allocation5 + $0x38] sm:$0xff]  ;;  %v98_v12 = vld [vmem:[#allocation2 + $0x80] sm:$0xff]  ;;  %v123_v15 = vld [vmem:[#allocation5 + $0x48] sm:$0xff] }
  0x4d   :  { %1619 = vmatpush3.bf16.msra.mxu0 %v1616_v3  ;;  %1720 = vmatpush3.bf16.msra.mxu1 %v1616_v3  ;;  %v1628_v13 = vpack.c.bf16 %v121_v11, %v120_v10  ;;  %v122_v14 = vld [vmem:[#allocation5 + $0x40] sm:$0xff]  ;;  %v124_v17 = vld [vmem:[#allocation5 + $0x50] sm:$0xff]  ;;  %v125_v18 = vld [vmem:[#allocation5 + $0x58] sm:$0xff] }
  0x4e   :  { %1621 = vmatprep.subr.bf16.mxu0 %v1620_v5  ;;  %1713 = vmatprep.subr.bf16.mxu1 %v1620_v5  ;;  %v1632_v16 = vpack.c.bf16 %v123_v15, %v122_v14  ;;  %v1636_v19 = vpack.c.bf16 %v125_v18, %v124_v17  ;;  %v126_v20 = vld [vmem:[#allocation5 + $0x60] sm:$0xff]  ;;  %v127_v21 = vld [vmem:[#allocation5 + $0x68] sm:$0xff]  ;;  %v128_v23 = vld [vmem:[#allocation5 + $0x70] sm:$0xff] }
  0x4f   :  { %1408 = vmatprep.mubr.f32.mxu0 %v82_v9  ;;  %1432 = vmatprep.mubr.f32.mxu1 %v98_v12  ;;  %v1640_v22 = vpack.c.bf16 %v127_v21, %v126_v20  ;;  %v129_v24 = vld [vmem:[#allocation5 + $0x78] sm:$0xff]  ;;  %v522_v26 = vld [vmem:[#allocation7] sm:$0xff]  ;;  %v523_v27 = vld [vmem:[#allocation7 + $0x8] sm:$0xff] }
  0x50   :  { %v1644_v25 = vpack.c.bf16 %v129_v24, %v128_v23  ;;  %v1648_v28 = vpack.c.bf16 %v523_v27, %v522_v26  ;;  %v524_v29 = vld [vmem:[#allocation7 + $0x10] sm:$0xff]  ;;  %v525_v30 = vld [vmem:[#allocation7 + $0x18] sm:$0xff]  ;;  %v83_v31 = vld [vmem:[#allocation2 + $0x8] sm:$0xff] }
  0x51   :  { %1623 = vmatpush3.bf16.msra.mxu0 %v1620_v5  ;;  %1721 = vmatpush3.bf16.msra.mxu1 %v1620_v5  ;;  %v99_v32 = vld [vmem:[#allocation2 + $0x88] sm:$0xff]  ;;  %v84_v33 = vld [vmem:[#allocation2 + $0x10] sm:$0xff]  ;;  %v1652_v35 = vpack.c.bf16 %v525_v30, %v524_v29  ;;  %v526_v36 = vld [vmem:[#allocation7 + $0x20] sm:$0xff] }
  0x52   :  { %1625 = vmatprep.subr.bf16.mxu0 %v1624_v8  ;;  %1714 = vmatprep.subr.bf16.mxu1 %v1624_v8  ;;  %v100_v34 = vld [vmem:[#allocation2 + $0x90] sm:$0xff]  ;;  %v527_v37 = vld [vmem:[#allocation7 + $0x28] sm:$0xff]  ;;  %v85_v38 = vld [vmem:[#allocation2 + $0x18] sm:$0xff] }
  0x53   :  { %v101_v39 = vld [vmem:[#allocation2 + $0x98] sm:$0xff]  ;;  %v86_v40 = vld [vmem:[#allocation2 + $0x20] sm:$0xff]  ;;  %v1656_v42 = vpack.c.bf16 %v527_v37, %v526_v36  ;;  %v87_v43 = vld [vmem:[#allocation2 + $0x28] sm:$0xff] }
  0x54   :  { %v102_v41 = vld [vmem:[#allocation2 + $0xa0] sm:$0xff]  ;;  %v103_v44 = vld [vmem:[#allocation2 + $0xa8] sm:$0xff]  ;;  %v88_v45 = vld [vmem:[#allocation2 + $0x30] sm:$0xff] }
  0x55   :  { %1627 = vmatpush3.bf16.msra.mxu0 %v1624_v8  ;;  %1722 = vmatpush3.bf16.msra.mxu1 %v1624_v8  ;;  %v104_v46 = vld [vmem:[#allocation2 + $0xb0] sm:$0xff]  ;;  %v89_v47 = vld [vmem:[#allocation2 + $0x38] sm:$0xff]  ;;  %v90_v49 = vld [vmem:[#allocation2 + $0x40] sm:$0xff] }
  0x56   :  { %1629 = vmatprep.subr.bf16.mxu0 %v1628_v13  ;;  %1715 = vmatprep.subr.bf16.mxu1 %v1628_v13  ;;  %v105_v48 = vld [vmem:[#allocation2 + $0xb8] sm:$0xff]  ;;  %v106_v50 = vld [vmem:[#allocation2 + $0xc0] sm:$0xff]  ;;  %v91_v51 = vld [vmem:[#allocation2 + $0x48] sm:$0xff] }
  0x57   :  { %v107_v52 = vld [vmem:[#allocation2 + $0xc8] sm:$0xff]  ;;  %v92_v53 = vld [vmem:[#allocation2 + $0x50] sm:$0xff]  ;;  %v93_v55 = vld [vmem:[#allocation2 + $0x58] sm:$0xff] }
  0x58   :  { %v108_v54 = vld [vmem:[#allocation2 + $0xd0] sm:$0xff]  ;;  %v109_v56 = vld [vmem:[#allocation2 + $0xd8] sm:$0xff]  ;;  %v94_v57 = vld [vmem:[#allocation2 + $0x60] sm:$0xff] }
  0x59   :  { %1631 = vmatpush3.bf16.msra.mxu0 %v1628_v13  ;;  %1723 = vmatpush3.bf16.msra.mxu1 %v1628_v13  ;;  %v110_v58 = vld [vmem:[#allocation2 + $0xe0] sm:$0xff]  ;;  %v95_v59 = vld [vmem:[#allocation2 + $0x68] sm:$0xff]  ;;  %v96_v61 = vld [vmem:[#allocation2 + $0x70] sm:$0xff] }
  0x5a   :  { %1633 = vmatprep.subr.bf16.mxu0 %v1632_v16  ;;  %1716 = vmatprep.subr.bf16.mxu1 %v1632_v16  ;;  %v111_v60 = vld [vmem:[#allocation2 + $0xe8] sm:$0xff]  ;;  %v112_v62 = vld [vmem:[#allocation2 + $0xf0] sm:$0xff]  ;;  %v97_v63 = vld [vmem:[#allocation2 + $0x78] sm:$0xff] }
  0x5b   :  { %v113_v0 = vld [vmem:[#allocation2 + $0xf8] sm:$0xff]  ;;  %v528_v1 = vld [vmem:[#allocation7 + $0x30] sm:$0xff]  ;;  %v530_v4 = vld [vmem:[#allocation7 + $0x40] sm:$0xff] }
  0x5c   :  { %v529_v2 = vld [vmem:[#allocation7 + $0x38] sm:$0xff]  ;;  %v531_v5 = vld [vmem:[#allocation7 + $0x48] sm:$0xff]  ;;  %v532_v7 = vld [vmem:[#allocation7 + $0x50] sm:$0xff] }
  0x5d   :  { %1635 = vmatpush3.bf16.msra.mxu0 %v1632_v16  ;;  %1724 = vmatpush3.bf16.msra.mxu1 %v1632_v16  ;;  %v1660_v3 = vpack.c.bf16 %v529_v2, %v528_v1  ;;  %v1664_v6 = vpack.c.bf16 %v531_v5, %v530_v4  ;;  %v533_v8 = vld [vmem:[#allocation7 + $0x58] sm:$0xff]  ;;  %v534_v10 = vld [vmem:[#allocation7 + $0x60] sm:$0xff]  ;;  %v535_v11 = vld [vmem:[#allocation7 + $0x68] sm:$0xff] }
  0x5e   :  { %1637 = vmatprep.subr.bf16.mxu0 %v1636_v19  ;;  %1717 = vmatprep.subr.bf16.mxu1 %v1636_v19  ;;  %v1668_v9 = vpack.c.bf16 %v533_v8, %v532_v7  ;;  %v1672_v12 = vpack.c.bf16 %v535_v11, %v534_v10  ;;  %v536_v13 = vld [vmem:[#allocation7 + $0x70] sm:$0xff]  ;;  %v537_v14 = vld [vmem:[#allocation7 + $0x78] sm:$0xff]  ;;  %v930_v16 = vld [vmem:[#allocation8] sm:$0xff] }
  0x5f   :  { %v1676_v15 = vpack.c.bf16 %v537_v14, %v536_v13  ;;  %v931_v17 = vld [vmem:[#allocation8 + $0x8] sm:$0xff]  ;;  %v932_v18 = vld [vmem:[#allocation8 + $0x10] sm:$0xff]  ;;  %v933_v20 = vld [vmem:[#allocation8 + $0x18] sm:$0xff] }
  0x60   :  { %v1684_v21 = vpack.c.bf16 %v933_v20, %v932_v18  ;;  %v935_v23 = vld [vmem:[#allocation8 + $0x28] sm:$0xff] }
  0x61   :  { %1639 = vmatpush3.bf16.msra.mxu0 %v1636_v19  ;;  %1725 = vmatpush3.bf16.msra.mxu1 %v1636_v19  ;;  %v1680_v19 = vpack.c.bf16 %v931_v17, %v930_v16 }
  0x62   :  { %1641 = vmatprep.subr.bf16.mxu0 %v1640_v22  ;;  %1718 = vmatprep.subr.bf16.mxu1 %v1640_v22 }
  0x65   :  { %1643 = vmatpush3.bf16.msra.mxu0 %v1640_v22  ;;  %1726 = vmatpush3.bf16.msra.mxu1 %v1640_v22  ;;  %v934_v22 = vld [vmem:[#allocation8 + $0x20] sm:$0xff] }
  0x66   :  { %1645 = vmatprep.subr.bf16.mxu0 %v1644_v25  ;;  %1719 = vmatprep.subr.bf16.mxu1 %v1644_v25  ;;  %v1688_v24 = vpack.c.bf16 %v935_v23, %v934_v22 }
  0x69   :  { %1647 = vmatpush3.bf16.msra.mxu0 %v1644_v25  ;;  %1727 = vmatpush3.bf16.msra.mxu1 %v1644_v25  ;;  %v2105_v25 = vld [vmem:[%s2451_s2] ss:$0 sm:$0xff] }
  0x6a   :  { %1649 = vmatprep.subr.bf16.mxu1 %v1648_v28  ;;  %1681 = vmatprep.subr.bf16.mxu0 %v1680_v19 }
  0x6c   :  { %1409 = vmatmul.mubr.f32.vlgmr.msra.gmra.mrb[0].mxu0 %v83_v31  ;;  %1433 = vmatmul.mubr.f32.vlgmr.msra.gmra.mrb[0].mxu1 %v99_v32 }
  0x6d   :  { %1411 = vmatprep.mubr.f32.mxu0 %v84_v33  ;;  %1435 = vmatprep.mubr.f32.mxu1 %v100_v34 }
  0x6e   :  { %1651 = vmatpush3.bf16.msra.mxu1 %v1648_v28  ;;  %1683 = vmatpush3.bf16.msra.mxu0 %v1680_v19 }
  0x6f   :  { %1653 = vmatprep.subr.bf16.mxu1 %v1652_v35  ;;  %1685 = vmatprep.subr.bf16.mxu0 %v1684_v21 }
  0x70   :  { %1412 = vmatmul.mubr.f32.gmra.mrb[2].mxu0 %v85_v38  ;;  %1436 = vmatmul.mubr.f32.gmra.mrb[2].mxu1 %v101_v39 }
  0x71   :  { %1414 = vmatprep.mubr.f32.mxu0 %v86_v40  ;;  %1438 = vmatprep.mubr.f32.mxu1 %v102_v41 }
  0x72   :  { %1655 = vmatpush3.bf16.msra.mxu1 %v1652_v35  ;;  %1687 = vmatpush3.bf16.msra.mxu0 %v1684_v21 }
  0x73   :  { %1657 = vmatprep.subr.bf16.mxu1 %v1656_v42  ;;  %1689 = vmatprep.subr.bf16.mxu0 %v1688_v24 }
  0x74   :  { %1415 = vmatmul.mubr.f32.gmra.mrb[4].mxu0 %v87_v43  ;;  %1439 = vmatmul.mubr.f32.gmra.mrb[4].mxu1 %v103_v44 }
  0x75   :  { %1417 = vmatprep.mubr.f32.mxu0 %v88_v45  ;;  %1441 = vmatprep.mubr.f32.mxu1 %v104_v46 }
  0x76   :  { %1659 = vmatpush3.bf16.msra.mxu1 %v1656_v42  ;;  %1691 = vmatpush3.bf16.msra.mxu0 %v1688_v24 }
  0x77   :  { %1661 = vmatprep.subr.bf16.mxu1 %v1660_v3 }
  0x78   :  { %1418 = vmatmul.mubr.f32.gmra.mrb[6].mxu0 %v89_v47  ;;  %1442 = vmatmul.mubr.f32.gmra.mrb[6].mxu1 %v105_v48 }
  0x79   :  { %1420 = vmatprep.mubr.f32.mxu0 %v90_v49  ;;  %1444 = vmatprep.mubr.f32.mxu1 %v106_v50 }
  0x7a   :  { %1663 = vmatpush3.bf16.msra.mxu1 %v1660_v3 }
  0x7b   :  { %1665 = vmatprep.subr.bf16.mxu1 %v1664_v6 }
  0x7c   :  { %1421 = vmatmul.mubr.f32.gmra.mrb[8].mxu0 %v91_v51  ;;  %1445 = vmatmul.mubr.f32.gmra.mrb[8].mxu1 %v107_v52 }
  0x7d   :  { %1423 = vmatprep.mubr.f32.mxu0 %v92_v53  ;;  %1447 = vmatprep.mubr.f32.mxu1 %v108_v54 }
  0x7e   :  { %1667 = vmatpush3.bf16.msra.mxu1 %v1664_v6 }
  0x7f   :  { %1669 = vmatprep.subr.bf16.mxu1 %v1668_v9 }
  0x80   :  { %1424 = vmatmul.mubr.f32.gmra.mrb[10].mxu0 %v93_v55  ;;  %1448 = vmatmul.mubr.f32.gmra.mrb[10].mxu1 %v109_v56 }
  0x81   :  { %1426 = vmatprep.mubr.f32.mxu0 %v94_v57  ;;  %1450 = vmatprep.mubr.f32.mxu1 %v110_v58 }
  0x82   :  { %1671 = vmatpush3.bf16.msra.mxu1 %v1668_v9 }
  0x83   :  { %1673 = vmatprep.subr.bf16.mxu1 %v1672_v12 }
  0x84   :  { %1427 = vmatmul.mubr.f32.gmra.mrb[12].mxu0 %v95_v59  ;;  %1451 = vmatmul.mubr.f32.gmra.mrb[12].mxu1 %v111_v60 }
  0x85   :  { %1429 = vmatprep.mubr.f32.mxu0 %v96_v61  ;;  %1453 = vmatprep.mubr.f32.mxu1 %v112_v62 }
  0x86   :  { %1675 = vmatpush3.bf16.msra.mxu1 %v1672_v12 }
  0x87   :  { %1677 = vmatprep.subr.bf16.mxu1 %v1676_v15 }
  0x88   :  { %1430 = vmatmul.mubr.f32.gmra.mrb[14].mxu0 %v97_v63  ;;  %1454 = vmatmul.mubr.f32.gmra.mrb[14].mxu1 %v113_v0 }
  0x8a   :  { %1679 = vmatpush3.bf16.msra.mxu1 %v1676_v15 }
 0x13f   :  { %v1410_v26 = vpop.f32.mrb[0].mxu0  ;;  %v1434_v27 = vpop.f32.mrb[0].mxu1 }
 0x140   :  { %v209_v28 = vadd.f32 %v1410_v26, %v2105_v25  ;;  %v203_v29 = vpop.f32.mrb[1].mxu0  ;;  %v2108_v30 = vpop.f32.mrb[1].mxu1  ;;  %v2150_v8 = vadd.f32 %v1434_v27, %v2105_v25 }
 0x141   :  { %v204_v31 = vadd.f32 %v2105_v25, %v203_v29  ;;  %v2166_v26 = vadd.f32 %v2105_v25, %v2108_v30 }
 0x142   :  { %v395_v32 = vmul.f32 0.70710677, %v209_v28  ;;  %v363_v4 = vmul.f32 0.5, %v209_v28  ;;  %v411_v24 = vmul.f32 0.70710677, %v2150_v8 }
 0x143   :  { %v394_v33 = vmul.f32 0.70710677, %v204_v31  ;;  %v1413_v34 = vpop.f32.mrb[2].mxu0  ;;  %v2111_v35 = vpop.f32.mrb[2].mxu1  ;;  %v362_v63 = vmul.f32 0.5, %v204_v31 }
 0x144   :  { %1735 = verf.f32 %v395_v32  ;;  %v219_v36 = vadd.f32 %v1413_v34, %v2105_v25  ;;  %v213_v37 = vpop.f32.mrb[3].mxu0  ;;  %v2114_v38 = vpop.f32.mrb[3].mxu1 }
 0x145   :  { %1737 = verf.f32 %v394_v33  ;;  %v214_v39 = vadd.f32 %v2105_v25, %v213_v37 }
 0x146   :  { %v397_v40 = vmul.f32 0.70710677, %v219_v36  ;;  %v365_v20 = vmul.f32 0.5, %v219_v36 }
 0x147   :  { %v396_v41 = vmul.f32 0.70710677, %v214_v39  ;;  %v1416_v42 = vpop.f32.mrb[4].mxu0  ;;  %v2120_v45 = vpop.f32.mrb[4].mxu1  ;;  %v364_v15 = vmul.f32 0.5, %v214_v39 }
 0x148   :  { %1739 = verf.f32 %v397_v40  ;;  %v2118_v43 = vadd.f32 %v1416_v42, %v2105_v25  ;;  %v223_v44 = vpop.f32.mrb[5].mxu0  ;;  %v2123_v47 = vpop.f32.mrb[5].mxu1 }
 0x149   :  { %1741 = verf.f32 %v396_v41  ;;  %v224_v46 = vadd.f32 %v2105_v25, %v223_v44 }
 0x14a   :  { %v399_v48 = vmul.f32 0.70710677, %v2118_v43  ;;  %v367_v42 = vmul.f32 0.5, %v2118_v43 }
 0x14b   :  { %v398_v49 = vmul.f32 0.70710677, %v224_v46  ;;  %v1419_v50 = vpop.f32.mrb[6].mxu0  ;;  %v2126_v51 = vpop.f32.mrb[6].mxu1  ;;  %v366_v37 = vmul.f32 0.5, %v224_v46  ;;  %v2184_v46 = vadd.f32 %v2105_v25, %v2114_v38 }
 0x14c   :  { %1743 = verf.f32 %v399_v48  ;;  %v2129_v52 = vadd.f32 %v1419_v50, %v2105_v25  ;;  %v233_v53 = vpop.f32.mrb[7].mxu0  ;;  %v2131_v54 = vpop.f32.mrb[7].mxu1 }
 0x14d   :  { %1745 = verf.f32 %v398_v49  ;;  %v2134_v55 = vadd.f32 %v2105_v25, %v233_v53  ;;  %v410_v49 = vmul.f32 0.70710677, %v2166_v26 }
 0x14e   :  { %v1736_v56 = vpop.eup %1735  ;;  %v401_v57 = vmul.f32 0.70710677, %v2129_v52 }
 0x14f   :  { %v1738_v58 = vpop.eup %1737  ;;  %v459_v59 = vadd.f32 1.0, %v1736_v56  ;;  %v400_v60 = vmul.f32 0.70710677, %v2134_v55  ;;  %v1422_v61 = vpop.f32.mrb[8].mxu0 }
 0x150   :  { %v2138_v62 = vpop.f32.mrb[8].mxu1  ;;  %v458_v0 = vadd.f32 1.0, %v1738_v58  ;;  %1747 = verf.f32 %v401_v57  ;;  %v2141_v1 = vadd.f32 %v1422_v61, %v2105_v25  ;;  %v243_v2 = vpop.f32.mrb[9].mxu0  ;;  %v368_v61 = vmul.f32 0.5, %v2134_v55 }
 0x151   :  { %v2143_v3 = vpop.f32.mrb[9].mxu1  ;;  %1749 = verf.f32 %v400_v60  ;;  %v2146_v5 = vadd.f32 %v2105_v25, %v243_v2  ;;  %v491_v11 = vmul.f32 %v459_v59, %v363_v4  ;;  %v369_v4 = vmul.f32 0.5, %v2129_v52 }
 0x152   :  { %v1740_v6 = vpop.eup %1739  ;;  %v403_v7 = vmul.f32 0.70710677, %v2141_v1  ;;  %v490_v9 = vmul.f32 %v458_v0, %v362_v63  ;;  %v2208_v52 = vadd.f32 %v2105_v25, %v2123_v47 }
 0x153   :  { %v1742_v10 = vpop.eup %1741  ;;  %v461_v12 = vadd.f32 1.0, %v1740_v6  ;;  %v402_v13 = vmul.f32 0.70710677, %v2146_v5  ;;  %v1425_v14 = vpop.f32.mrb[10].mxu0  ;;  %v2199_v6 = vadd.f32 %v2111_v35, %v2105_v25 }
 0x154   :  { %v460_v16 = vadd.f32 1.0, %v1742_v10  ;;  %1751 = verf.f32 %v403_v7  ;;  %v2154_v17 = vadd.f32 %v1425_v14, %v2105_v25  ;;  %v253_v18 = vpop.f32.mrb[11].mxu0  ;;  %1488 = vmatprep.mubr.f32.mxu1 %v490_v9  ;;  %v2156_v19 = vpop.f32.mrb[10].mxu1  ;;  %v412_v9 = vmul.f32 0.70710677, %v2184_v46 }
 0x155   :  { %1753 = verf.f32 %v402_v13  ;;  %v2159_v21 = vadd.f32 %v2105_v25, %v253_v18  ;;  %1489 = vmatmul.mubr.f32.vlgmr.msra.gmra.mrb[16].mxu1 %v491_v11  ;;  %v2161_v22 = vpop.f32.mrb[11].mxu1  ;;  %v493_v34 = vmul.f32 %v461_v12, %v365_v20  ;;  %v371_v18 = vmul.f32 0.5, %v2141_v1 }
 0x156   :  { %v1744_v23 = vpop.eup %1743  ;;  %v405_v27 = vmul.f32 0.70710677, %v2154_v17  ;;  %v492_v28 = vmul.f32 %v460_v16, %v364_v15  ;;  %v370_v15 = vmul.f32 0.5, %v2146_v5  ;;  %v413_v20 = vmul.f32 0.70710677, %v2199_v6 }
 0x157   :  { %v1746_v29 = vpop.eup %1745  ;;  %v463_v31 = vadd.f32 1.0, %v1744_v23  ;;  %v404_v32 = vmul.f32 0.70710677, %v2159_v21  ;;  %v1428_v33 = vpop.f32.mrb[12].mxu0  ;;  %v2216_v23 = vadd.f32 %v2120_v45, %v2105_v25 }
 0x158   :  { %v2170_v36 = vpop.f32.mrb[12].mxu1  ;;  %v462_v39 = vadd.f32 1.0, %v1746_v29  ;;  %1755 = verf.f32 %v405_v27  ;;  %v2173_v40 = vadd.f32 %v1428_v33, %v2105_v25  ;;  %v263_v41 = vpop.f32.mrb[13].mxu0  ;;  %1491 = vmatprep.mubr.f32.mxu1 %v492_v28  ;;  %v414_v29 = vmul.f32 0.70710677, %v2208_v52 }
 0x159   :  { %v2175_v30 = vpop.f32.mrb[13].mxu1  ;;  %1757 = verf.f32 %v404_v32  ;;  %v2179_v44 = vadd.f32 %v2105_v25, %v263_v41  ;;  %1492 = vmatmul.mubr.f32.gmra.mrb[18].mxu1 %v493_v34  ;;  %v495_v59 = vmul.f32 %v463_v31, %v367_v42  ;;  %v372_v31 = vmul.f32 0.5, %v2159_v21 }
 0x15a   :  { %v1748_v48 = vpop.eup %1747  ;;  %v407_v50 = vmul.f32 0.70710677, %v2173_v40  ;;  %v494_v53 = vmul.f32 %v462_v39, %v366_v37  ;;  %1759 = verf.f32 %v411_v24  ;;  %v2220_v24 = vadd.f32 %v2105_v25, %v2131_v54 }
 0x15b   :  { %v1750_v56 = vpop.eup %1749  ;;  %v465_v57 = vadd.f32 1.0, %v1748_v48  ;;  %v406_v43 = vmul.f32 0.70710677, %v2179_v44  ;;  %v1431_v58 = vpop.f32.mrb[14].mxu0  ;;  %v373_v33 = vmul.f32 0.5, %v2154_v17  ;;  %v2228_v37 = vadd.f32 %v2126_v51, %v2105_v25 }
 0x15c   :  { %v2188_v60 = vpop.f32.mrb[14].mxu1  ;;  %v464_v63 = vadd.f32 1.0, %v1750_v56  ;;  %1761 = verf.f32 %v407_v50  ;;  %v2192_v0 = vadd.f32 %v1431_v58, %v2105_v25  ;;  %v273_v38 = vpop.f32.mrb[15].mxu0  ;;  %1494 = vmatprep.mubr.f32.mxu1 %v494_v53  ;;  %v415_v34 = vmul.f32 0.70710677, %v2216_v23 }
 0x15d   :  { %v2194_v2 = vpop.f32.mrb[15].mxu1  ;;  %1763 = verf.f32 %v406_v43  ;;  %v2202_v7 = vadd.f32 %v2105_v25, %v273_v38  ;;  %1495 = vmatmul.mubr.f32.gmra.mrb[20].mxu1 %v495_v59  ;;  %v497_v14 = vmul.f32 %v465_v57, %v369_v4  ;;  %v416_v39 = vmul.f32 0.70710677, %v2220_v24 }
 0x15e   :  { %v1752_v55 = vpop.eup %1751  ;;  %1765 = verf.f32 %v410_v49  ;;  %v409_v10 = vmul.f32 0.70710677, %v2192_v0  ;;  %v496_v11 = vmul.f32 %v464_v63, %v368_v61  ;;  %v2233_v21 = vadd.f32 %v2105_v25, %v2143_v3 }
 0x15f   :  { %v1754_v12 = vpop.eup %1753  ;;  %v467_v13 = vadd.f32 1.0, %v1752_v55  ;;  %v408_v35 = vmul.f32 0.70710677, %v2202_v7  ;;  %v374_v50 = vmul.f32 0.5, %v2179_v44  ;;  %v375_v56 = vmul.f32 0.5, %v2173_v40 }
 0x160   :  { %v466_v16 = vadd.f32 1.0, %v1754_v12  ;;  %1767 = verf.f32 %v409_v10  ;;  %1497 = vmatprep.mubr.f32.mxu1 %v496_v11  ;;  %v417_v57 = vmul.f32 0.70710677, %v2228_v37  ;;  %v2240_v43 = vadd.f32 %v2138_v62, %v2105_v25 }
 0x161   :  { %1769 = verf.f32 %v408_v35  ;;  %1498 = vmatmul.mubr.f32.gmra.mrb[22].mxu1 %v497_v14  ;;  %v499_v1 = vmul.f32 %v467_v13, %v371_v18  ;;  %v418_v61 = vmul.f32 0.70710677, %v2233_v21  ;;  %v2245_v44 = vadd.f32 %v2105_v25, %v2161_v22 }
 0x162   :  { %v1756_v47 = vpop.eup %1755  ;;  %v498_v27 = vmul.f32 %v466_v16, %v370_v15  ;;  %1771 = verf.f32 %v412_v9  ;;  %v378_v63 = vmul.f32 0.5, %v2166_v26  ;;  %v376_v4 = vmul.f32 0.5, %v2202_v7 }
 0x163   :  { %v1758_v5 = vpop.eup %1757  ;;  %v469_v28 = vadd.f32 1.0, %v1756_v47  ;;  %1773 = verf.f32 %v413_v20  ;;  %v379_v62 = vmul.f32 0.5, %v2150_v8  ;;  %v377_v11 = vmul.f32 0.5, %v2192_v0 }
 0x164   :  { %v468_v32 = vadd.f32 1.0, %v1758_v5  ;;  %1500 = vmatprep.mubr.f32.mxu1 %v498_v27  ;;  %v1760_v45 = vpop.eup %1759  ;;  %1775 = verf.f32 %v414_v29  ;;  %v419_v12 = vmul.f32 0.70710677, %v2240_v43  ;;  %v2254_v22 = vadd.f32 %v2156_v19, %v2105_v25 }
 0x165   :  { %1501 = vmatmul.mubr.f32.gmra.mrb[24].mxu1 %v499_v1  ;;  %v501_v17 = vmul.f32 %v469_v28, %v373_v33  ;;  %1777 = verf.f32 %v415_v34  ;;  %v475_v10 = vadd.f32 1.0, %v1760_v45  ;;  %v420_v7 = vmul.f32 0.70710677, %v2245_v44 }
 0x166   :  { %v1762_v54 = vpop.eup %1761  ;;  %v500_v41 = vmul.f32 %v468_v32, %v372_v31  ;;  %1779 = verf.f32 %v416_v39  ;;  %v2259_v35 = vadd.f32 %v2105_v25, %v2175_v30  ;;  %v380_v0 = vmul.f32 0.5, %v2184_v46 }
 0x167   :  { %v1764_v42 = vpop.eup %1763  ;;  %v471_v48 = vadd.f32 1.0, %v1762_v54  ;;  %1781 = verf.f32 %v417_v57  ;;  %v381_v18 = vmul.f32 0.5, %v2199_v6  ;;  %v421_v20 = vmul.f32 0.70710677, %v2254_v22 }
 0x168   :  { %v1766_v49 = vpop.eup %1765  ;;  %v470_v53 = vadd.f32 1.0, %v1764_v42  ;;  %1503 = vmatprep.mubr.f32.mxu1 %v500_v41  ;;  %1783 = verf.f32 %v418_v61  ;;  %v349_v47 = vadd.f32 %v2170_v36, %v2105_v25  ;;  %v422_v27 = vmul.f32 0.70710677, %v2259_v35 }
 0x169   :  { %1504 = vmatmul.mubr.f32.gmra.mrb[26].mxu1 %v501_v17  ;;  %v503_v40 = vmul.f32 %v471_v48, %v375_v56  ;;  %v474_v38 = vadd.f32 1.0, %v1766_v49  ;;  %1785 = verf.f32 %v419_v12  ;;  %v354_v46 = vadd.f32 %v2105_v25, %v2194_v2 }
 0x16a   :  { %v1768_v51 = vpop.eup %1767  ;;  %v502_v3 = vmul.f32 %v470_v53, %v374_v50  ;;  %1787 = verf.f32 %v420_v7  ;;  %v507_v5 = vmul.f32 %v475_v10, %v379_v62  ;;  %v382_v6 = vmul.f32 0.5, %v2208_v52 }
 0x16b   :  { %v1770_v58 = vpop.eup %1769  ;;  %v473_v59 = vadd.f32 1.0, %v1768_v51  ;;  %v506_v15 = vmul.f32 %v474_v38, %v378_v63  ;;  %v383_v31 = vmul.f32 0.5, %v2216_v23  ;;  %1789 = verf.f32 %v421_v20  ;;  %v940_v20 = vld [vmem:[#allocation8 + $0x50] sm:$0xff] }
 0x16c   :  { %v472_v55 = vadd.f32 1.0, %v1770_v58  ;;  %1506 = vmatprep.mubr.f32.mxu1 %v502_v3  ;;  %v1772_v9 = vpop.eup %1771  ;;  %v423_v32 = vmul.f32 0.70710677, %v349_v47  ;;  %v359_v36 = vadd.f32 %v2188_v60, %v2105_v25  ;;  %1791 = verf.f32 %v422_v27  ;;  %v942_v27 = vld [vmem:[#allocation8 + $0x60] sm:$0xff] }
 0x16d   :  { %1507 = vmatmul.mubr.f32.gmra.mrb[28].mxu1 %v503_v40  ;;  %v1774_v13 = vpop.eup %1773  ;;  %v505_v8 = vmul.f32 %v473_v59, %v377_v11  ;;  %v476_v14 = vadd.f32 1.0, %v1772_v9  ;;  %v424_v33 = vmul.f32 0.70710677, %v354_v46  ;;  %v384_v54 = vmul.f32 0.5, %v2220_v24 }
 0x16e   :  { %v504_v26 = vmul.f32 %v472_v55, %v376_v4  ;;  %v1776_v16 = vpop.eup %1775  ;;  %v477_v19 = vadd.f32 1.0, %v1774_v13  ;;  %1793 = verf.f32 %v423_v32  ;;  %v425_v42 = vmul.f32 0.70710677, %v359_v36 }
 0x16f   :  { %v1778_v30 = vpop.eup %1777  ;;  %v478_v29 = vadd.f32 1.0, %v1776_v16  ;;  %v508_v1 = vmul.f32 %v476_v14, %v380_v0  ;;  %v385_v23 = vmul.f32 0.5, %v2228_v37  ;;  %1795 = verf.f32 %v424_v33  ;;  %v936_v0 = vld [vmem:[#allocation8 + $0x30] sm:$0xff]  ;;  %v937_v14 = vld [vmem:[#allocation8 + $0x38] sm:$0xff]  ;;  %v938_v16 = vld [vmem:[#allocation8 + $0x40] sm:$0xff] }
 0x170   :  { %1509 = vmatprep.mubr.f32.mxu1 %v504_v26  ;;  %v1780_v28 = vpop.eup %1779  ;;  %v479_v45 = vadd.f32 1.0, %v1778_v30  ;;  %v509_v34 = vmul.f32 %v477_v19, %v381_v18  ;;  %v386_v17 = vmul.f32 0.5, %v2233_v21  ;;  %1797 = verf.f32 %v425_v42  ;;  %v939_v18 = vld [vmem:[#allocation8 + $0x48] sm:$0xff] }
 0x171   :  { %1510 = vmatmul.mubr.f32.gmra.mrb[30].mxu1 %v505_v8  ;;  %v1782_v2 = vpop.eup %1781  ;;  %v480_v39 = vadd.f32 1.0, %v1780_v28  ;;  %v510_v52 = vmul.f32 %v478_v29, %v382_v6  ;;  %v387_v24 = vmul.f32 0.5, %v2240_v43  ;;  %v388_v3 = vmul.f32 0.5, %v2245_v44  ;;  %v944_v28 = vld [vmem:[#allocation8 + $0x70] sm:$0xff]  ;;  %v945_v6 = vld [vmem:[#allocation8 + $0x78] sm:$0xff] }
 0x172   :  { %1512 = vmatprep.mubr.f32.mxu1 %v506_v15  ;;  %v1784_v41 = vpop.eup %1783  ;;  %v481_v48 = vadd.f32 1.0, %v1782_v2  ;;  %v511_v25 = vmul.f32 %v479_v45, %v383_v31  ;;  %v389_v21 = vmul.f32 0.5, %v2254_v22  ;;  %v390_v38 = vmul.f32 0.5, %v2259_v35 }
 0x173   :  { %v1786_v60 = vpop.eup %1785  ;;  %v482_v49 = vadd.f32 1.0, %v1784_v41  ;;  %v512_v50 = vmul.f32 %v480_v39, %v384_v54  ;;  %v391_v9 = vmul.f32 0.5, %v349_v47  ;;  %v392_v11 = vmul.f32 0.5, %v354_v46  ;;  %v941_v47 = vld [vmem:[#allocation8 + $0x58] sm:$0xff]  ;;  %v943_v46 = vld [vmem:[#allocation8 + $0x68] sm:$0xff] }
 0x174   :  { %v1788_v53 = vpop.eup %1787  ;;  %v483_v56 = vadd.f32 1.0, %v1786_v60  ;;  %v513_v51 = vmul.f32 %v481_v48, %v385_v23  ;;  %v393_v22 = vmul.f32 0.5, %v359_v36  ;;  %v1692_v15 = vpack.c.bf16 %v937_v14, %v936_v0 }
 0x175   :  { %1513 = vmatmul.mubr.f32.gmra.mrb[32].mxu1 %v507_v5  ;;  %v1790_v57 = vpop.eup %1789  ;;  %v484_v37 = vadd.f32 1.0, %v1788_v53  ;;  %v514_v58 = vmul.f32 %v482_v49, %v386_v17  ;;  %v1696_v19 = vpack.c.bf16 %v939_v18, %v938_v16  ;;  %v1700_v30 = vpack.c.bf16 %v941_v47, %v940_v20 }
 0x176   :  { %1515 = vmatprep.mubr.f32.mxu1 %v508_v1  ;;  %v1792_v59 = vpop.eup %1791  ;;  %v485_v61 = vadd.f32 1.0, %v1790_v57  ;;  %v515_v40 = vmul.f32 %v483_v56, %v387_v24  ;;  %1693 = vmatprep.subr.bf16.mxu0 %v1692_v15  ;;  %v1704_v5 = vpack.c.bf16 %v943_v46, %v942_v27  ;;  %v1708_v29 = vpack.c.bf16 %v945_v6, %v944_v28  ;;  %v2283_v1 = vld [vmem:[%s2453_s4] ss:$0 sm:$0xff] }
 0x177   :  { %v486_v4 = vadd.f32 1.0, %v1792_v59  ;;  %v516_v55 = vmul.f32 %v484_v37, %v388_v3  ;;  %1695 = vmatpush3.bf16.msra.mxu0 %v1692_v15 }
 0x178   :  { %v1794_v63 = vpop.eup %1793  ;;  %v517_v44 = vmul.f32 %v485_v61, %v389_v21  ;;  %1697 = vmatprep.subr.bf16.mxu0 %v1696_v19 }
 0x179   :  { %1516 = vmatmul.mubr.f32.gmra.mrb[34].mxu1 %v509_v34  ;;  %v1796_v43 = vpop.eup %1795  ;;  %v487_v62 = vadd.f32 1.0, %v1794_v63  ;;  %v518_v26 = vmul.f32 %v486_v4, %v390_v38 }
 0x17a   :  { %1518 = vmatprep.mubr.f32.mxu1 %v510_v52  ;;  %v1798_v10 = vpop.eup %1797  ;;  %v488_v12 = vadd.f32 1.0, %v1796_v43 }
 0x17b   :  { %v489_v13 = vadd.f32 1.0, %v1798_v10  ;;  %v519_v7 = vmul.f32 %v487_v62, %v391_v9  ;;  %1699 = vmatpush3.bf16.msra.mxu0 %v1696_v19 }
 0x17c   :  { %v520_v8 = vmul.f32 %v488_v12, %v392_v11  ;;  %1701 = vmatprep.subr.bf16.mxu0 %v1700_v30 }
 0x17d   :  { %1519 = vmatmul.mubr.f32.gmra.mrb[36].mxu1 %v511_v25  ;;  %v521_v35 = vmul.f32 %v489_v13, %v393_v22 }
 0x17e   :  { %1521 = vmatprep.mubr.f32.mxu1 %v512_v50 }
 0x17f   :  { %1703 = vmatpush3.bf16.msra.mxu0 %v1700_v30 }
 0x180   :  { %1705 = vmatprep.subr.bf16.mxu0 %v1704_v5 }
 0x181   :  { %1522 = vmatmul.mubr.f32.gmra.mrb[38].mxu1 %v513_v51 }
 0x182   :  { %1524 = vmatprep.mubr.f32.mxu1 %v514_v58 }
 0x183   :  { %1707 = vmatpush3.bf16.msra.mxu0 %v1704_v5 }
 0x184   :  { %1709 = vmatprep.subr.bf16.mxu0 %v1708_v29 }
 0x185   :  { %1525 = vmatmul.mubr.f32.gmra.mrb[40].mxu1 %v515_v40 }
 0x186   :  { %1527 = vmatprep.mubr.f32.mxu1 %v516_v55 }
 0x187   :  { %1711 = vmatpush3.bf16.msra.mxu0 %v1708_v29 }
 0x189   :  { %1528 = vmatmul.mubr.f32.gmra.mrb[42].mxu1 %v517_v44 }
 0x18a   :  { %1530 = vmatprep.mubr.f32.mxu1 %v518_v26 }
 0x18d   :  { %1531 = vmatmul.mubr.f32.gmra.mrb[44].mxu1 %v519_v7 }
 0x18e   :  { %1533 = vmatprep.mubr.f32.mxu1 %v520_v8 }
 0x191   :  { %1534 = vmatmul.mubr.f32.gmra.mrb[46].mxu1 %v521_v35 }
 0x228   :  { %v1490_v31 = vpop.f32.mrb[16].mxu1 }
 0x229   :  { %v617_v32 = vadd.f32 %v1490_v31, %v2283_v1  ;;  %v611_v36 = vpop.f32.mrb[17].mxu1 }
 0x22a   :  { %v612_v45 = vadd.f32 %v2283_v1, %v611_v36 }
 0x22b   :  { %v803_v33 = vmul.f32 0.70710677, %v617_v32  ;;  %v771_v38 = vmul.f32 0.5, %v617_v32 }
 0x22c   :  { %v802_v34 = vmul.f32 0.70710677, %v612_v45  ;;  %v1493_v2 = vpop.f32.mrb[18].mxu1  ;;  %v770_v21 = vmul.f32 0.5, %v612_v45 }
 0x22d   :  { %1799 = verf.f32 %v803_v33  ;;  %v627_v54 = vadd.f32 %v1493_v2, %v2283_v1  ;;  %v621_v39 = vpop.f32.mrb[19].mxu1 }
 0x22e   :  { %1801 = verf.f32 %v802_v34  ;;  %v622_v52 = vadd.f32 %v2283_v1, %v621_v39 }
 0x22f   :  { %v805_v41 = vmul.f32 0.70710677, %v627_v54  ;;  %v773_v8 = vmul.f32 0.5, %v627_v54 }
 0x230   :  { %v804_v42 = vmul.f32 0.70710677, %v622_v52  ;;  %v1496_v23 = vpop.f32.mrb[20].mxu1  ;;  %v772_v26 = vmul.f32 0.5, %v622_v52 }
 0x231   :  { %1803 = verf.f32 %v805_v41  ;;  %v637_v48 = vadd.f32 %v1496_v23, %v2283_v1  ;;  %v631_v25 = vpop.f32.mrb[21].mxu1 }
 0x232   :  { %1805 = verf.f32 %v804_v42  ;;  %v632_v60 = vadd.f32 %v2283_v1, %v631_v25 }
 0x233   :  { %v807_v17 = vmul.f32 0.70710677, %v637_v48  ;;  %v775_v28 = vmul.f32 0.5, %v637_v48 }
 0x234   :  { %v806_v49 = vmul.f32 0.70710677, %v632_v60  ;;  %v1499_v50 = vpop.f32.mrb[22].mxu1  ;;  %v774_v30 = vmul.f32 0.5, %v632_v60 }
 0x235   :  { %1807 = verf.f32 %v807_v17  ;;  %v2292_v53 = vadd.f32 %v1499_v50, %v2283_v1  ;;  %v641_v24 = vpop.f32.mrb[23].mxu1 }
 0x236   :  { %1809 = verf.f32 %v806_v49  ;;  %v642_v56 = vadd.f32 %v2283_v1, %v641_v24 }
 0x237   :  { %v1800_v51 = vpop.eup %1799  ;;  %v809_v57 = vmul.f32 0.70710677, %v2292_v53  ;;  %v777_v42 = vmul.f32 0.5, %v2292_v53 }
 0x238   :  { %v1802_v3 = vpop.eup %1801  ;;  %v867_v37 = vadd.f32 1.0, %v1800_v51  ;;  %v808_v58 = vmul.f32 0.70710677, %v642_v56  ;;  %v1502_v59 = vpop.f32.mrb[24].mxu1  ;;  %v776_v54 = vmul.f32 0.5, %v642_v56 }
 0x239   :  { %v866_v61 = vadd.f32 1.0, %v1802_v3  ;;  %1811 = verf.f32 %v809_v57  ;;  %v2297_v40 = vadd.f32 %v1502_v59, %v2283_v1  ;;  %v651_v63 = vpop.f32.mrb[25].mxu1 }
 0x23a   :  { %1813 = verf.f32 %v808_v58  ;;  %v2300_v4 = vadd.f32 %v2283_v1, %v651_v63  ;;  %v899_v44 = vmul.f32 %v867_v37, %v771_v38 }
 0x23b   :  { %v1804_v55 = vpop.eup %1803  ;;  %v811_v43 = vmul.f32 0.70710677, %v2297_v40  ;;  %v898_v9 = vmul.f32 %v866_v61, %v770_v21  ;;  %v779_v37 = vmul.f32 0.5, %v2297_v40 }
 0x23c   :  { %v1806_v62 = vpop.eup %1805  ;;  %v869_v10 = vadd.f32 1.0, %v1804_v55  ;;  %v810_v11 = vmul.f32 0.70710677, %v2300_v4  ;;  %v1505_v12 = vpop.f32.mrb[26].mxu1  ;;  %v778_v51 = vmul.f32 0.5, %v2300_v4 }
 0x23d   :  { %v868_v22 = vadd.f32 1.0, %v1806_v62  ;;  %1815 = verf.f32 %v811_v43  ;;  %v2305_v13 = vadd.f32 %v1505_v12, %v2283_v1  ;;  %v661_v7 = vpop.f32.mrb[27].mxu1  ;;  %1568 = vmatprep.mubr.f32.mxu0 %v898_v9 }
 0x23e   :  { %1817 = verf.f32 %v810_v11  ;;  %v2308_v35 = vadd.f32 %v2283_v1, %v661_v7  ;;  %1569 = vmatmul.mubr.f32.vlgmr.msra.gmra.mrb[16].mxu0 %v899_v44  ;;  %v901_v47 = vmul.f32 %v869_v10, %v773_v8 }
 0x23f   :  { %v1808_v0 = vpop.eup %1807  ;;  %v813_v14 = vmul.f32 0.70710677, %v2305_v13  ;;  %v900_v15 = vmul.f32 %v868_v22, %v772_v26  ;;  %v781_v10 = vmul.f32 0.5, %v2305_v13 }
 0x240   :  { %v1810_v16 = vpop.eup %1809  ;;  %v871_v18 = vadd.f32 1.0, %v1808_v0  ;;  %v812_v19 = vmul.f32 0.70710677, %v2308_v35  ;;  %v1508_v20 = vpop.f32.mrb[28].mxu1  ;;  %v780_v9 = vmul.f32 0.5, %v2308_v35 }
 0x241   :  { %v870_v27 = vadd.f32 1.0, %v1810_v16  ;;  %1819 = verf.f32 %v813_v14  ;;  %v2313_v46 = vadd.f32 %v1508_v20, %v2283_v1  ;;  %v671_v5 = vpop.f32.mrb[29].mxu1  ;;  %1571 = vmatprep.mubr.f32.mxu0 %v900_v15 }
 0x242   :  { %1821 = verf.f32 %v812_v19  ;;  %v2316_v6 = vadd.f32 %v2283_v1, %v671_v5  ;;  %1572 = vmatmul.mubr.f32.gmra.mrb[18].mxu0 %v901_v47  ;;  %v903_v2 = vmul.f32 %v871_v18, %v775_v28 }
 0x243   :  { %v1812_v29 = vpop.eup %1811  ;;  %v815_v31 = vmul.f32 0.70710677, %v2313_v46  ;;  %v902_v32 = vmul.f32 %v870_v27, %v774_v30  ;;  %v783_v19 = vmul.f32 0.5, %v2313_v46 }
 0x244   :  { %v1814_v36 = vpop.eup %1813  ;;  %v873_v45 = vadd.f32 1.0, %v1812_v29  ;;  %v814_v33 = vmul.f32 0.70710677, %v2316_v6  ;;  %v1511_v34 = vpop.f32.mrb[30].mxu1  ;;  %v782_v15 = vmul.f32 0.5, %v2316_v6 }
 0x245   :  { %v872_v39 = vadd.f32 1.0, %v1814_v36  ;;  %1823 = verf.f32 %v815_v31  ;;  %v2321_v52 = vadd.f32 %v1511_v34, %v2283_v1  ;;  %v681_v41 = vpop.f32.mrb[31].mxu1  ;;  %1574 = vmatprep.mubr.f32.mxu0 %v902_v32 }
 0x246   :  { %1825 = verf.f32 %v814_v33  ;;  %v2325_v23 = vadd.f32 %v2283_v1, %v681_v41  ;;  %1575 = vmatmul.mubr.f32.gmra.mrb[20].mxu0 %v903_v2  ;;  %v905_v56 = vmul.f32 %v873_v45, %v777_v42 }
 0x247   :  { %v1816_v48 = vpop.eup %1815  ;;  %v817_v25 = vmul.f32 0.70710677, %v2321_v52  ;;  %v904_v60 = vmul.f32 %v872_v39, %v776_v54  ;;  %v785_v33 = vmul.f32 0.5, %v2321_v52 }
 0x248   :  { %v1818_v17 = vpop.eup %1817  ;;  %v875_v49 = vadd.f32 1.0, %v1816_v48  ;;  %v816_v50 = vmul.f32 0.70710677, %v2325_v23  ;;  %v1514_v24 = vpop.f32.mrb[32].mxu1  ;;  %v784_v32 = vmul.f32 0.5, %v2325_v23 }
 0x249   :  { %v874_v57 = vadd.f32 1.0, %v1818_v17  ;;  %1827 = verf.f32 %v817_v25  ;;  %v2331_v53 = vadd.f32 %v1514_v24, %v2283_v1  ;;  %v691_v3 = vpop.f32.mrb[33].mxu1  ;;  %1577 = vmatprep.mubr.f32.mxu0 %v904_v60 }
 0x24a   :  { %1829 = verf.f32 %v816_v50  ;;  %v2335_v58 = vadd.f32 %v2283_v1, %v691_v3  ;;  %1578 = vmatmul.mubr.f32.gmra.mrb[22].mxu0 %v905_v56  ;;  %v907_v43 = vmul.f32 %v875_v49, %v779_v37 }
 0x24b   :  { %v1820_v59 = vpop.eup %1819  ;;  %v819_v21 = vmul.f32 0.70710677, %v2331_v53  ;;  %v906_v61 = vmul.f32 %v874_v57, %v778_v51  ;;  %v787_v50 = vmul.f32 0.5, %v2331_v53 }
 0x24c   :  { %v1822_v63 = vpop.eup %1821  ;;  %v877_v38 = vadd.f32 1.0, %v1820_v59  ;;  %v818_v4 = vmul.f32 0.70710677, %v2335_v58  ;;  %v1517_v55 = vpop.f32.mrb[34].mxu1  ;;  %v786_v60 = vmul.f32 0.5, %v2335_v58 }
 0x24d   :  { %v876_v62 = vadd.f32 1.0, %v1822_v63  ;;  %1831 = verf.f32 %v819_v21  ;;  %v2341_v40 = vadd.f32 %v1517_v55, %v2283_v1  ;;  %v701_v44 = vpop.f32.mrb[35].mxu1  ;;  %1580 = vmatprep.mubr.f32.mxu0 %v906_v61 }
 0x24e   :  { %1833 = verf.f32 %v818_v4  ;;  %v2345_v11 = vadd.f32 %v2283_v1, %v701_v44  ;;  %1581 = vmatmul.mubr.f32.gmra.mrb[24].mxu0 %v907_v43  ;;  %v909_v14 = vmul.f32 %v877_v38, %v781_v10 }
 0x24f   :  { %v1824_v12 = vpop.eup %1823  ;;  %v821_v26 = vmul.f32 0.70710677, %v2341_v40  ;;  %v908_v22 = vmul.f32 %v876_v62, %v780_v9  ;;  %v789_v4 = vmul.f32 0.5, %v2341_v40 }
 0x250   :  { %v1826_v7 = vpop.eup %1825  ;;  %v879_v8 = vadd.f32 1.0, %v1824_v12  ;;  %v820_v35 = vmul.f32 0.70710677, %v2345_v11  ;;  %v1520_v0 = vpop.f32.mrb[36].mxu1  ;;  %v788_v61 = vmul.f32 0.5, %v2345_v11 }
 0x251   :  { %v878_v16 = vadd.f32 1.0, %v1826_v7  ;;  %1835 = verf.f32 %v821_v26  ;;  %v2351_v13 = vadd.f32 %v1520_v0, %v2283_v1  ;;  %v711_v18 = vpop.f32.mrb[37].mxu1  ;;  %1583 = vmatprep.mubr.f32.mxu0 %v908_v22 }
 0x252   :  { %1837 = verf.f32 %v820_v35  ;;  %v2355_v20 = vadd.f32 %v2283_v1, %v711_v18  ;;  %1584 = vmatmul.mubr.f32.gmra.mrb[26].mxu0 %v909_v14  ;;  %v911_v31 = vmul.f32 %v879_v8, %v783_v19 }
 0x253   :  { %v1828_v47 = vpop.eup %1827  ;;  %v823_v30 = vmul.f32 0.70710677, %v2351_v13  ;;  %v910_v27 = vmul.f32 %v878_v16, %v782_v15  ;;  %v791_v35 = vmul.f32 0.5, %v2351_v13 }
 0x254   :  { %v1830_v5 = vpop.eup %1829  ;;  %v881_v28 = vadd.f32 1.0, %v1828_v47  ;;  %v822_v6 = vmul.f32 0.70710677, %v2355_v20  ;;  %v1523_v29 = vpop.f32.mrb[38].mxu1  ;;  %v790_v22 = vmul.f32 0.5, %v2355_v20 }
 0x255   :  { %v880_v36 = vadd.f32 1.0, %v1830_v5  ;;  %1839 = verf.f32 %v823_v30  ;;  %v2361_v46 = vadd.f32 %v1523_v29, %v2283_v1  ;;  %v721_v45 = vpop.f32.mrb[39].mxu1  ;;  %1586 = vmatprep.mubr.f32.mxu0 %v910_v27 }
 0x256   :  { %1841 = verf.f32 %v822_v6  ;;  %v2365_v34 = vadd.f32 %v2283_v1, %v721_v45  ;;  %1587 = vmatmul.mubr.f32.gmra.mrb[28].mxu0 %v911_v31  ;;  %v913_v25 = vmul.f32 %v881_v28, %v785_v33 }
 0x257   :  { %v1832_v2 = vpop.eup %1831  ;;  %v825_v54 = vmul.f32 0.70710677, %v2361_v46  ;;  %v912_v39 = vmul.f32 %v880_v36, %v784_v32  ;;  %v793_v13 = vmul.f32 0.5, %v2361_v46 }
 0x258   :  { %v1834_v41 = vpop.eup %1833  ;;  %v883_v42 = vadd.f32 1.0, %v1832_v2  ;;  %v824_v23 = vmul.f32 0.70710677, %v2365_v34  ;;  %v1526_v48 = vpop.f32.mrb[40].mxu1  ;;  %v792_v27 = vmul.f32 0.5, %v2365_v34 }
 0x259   :  { %v882_v17 = vadd.f32 1.0, %v1834_v41  ;;  %1843 = verf.f32 %v825_v54  ;;  %v2371_v52 = vadd.f32 %v1526_v48, %v2283_v1  ;;  %v731_v49 = vpop.f32.mrb[41].mxu1  ;;  %1589 = vmatprep.mubr.f32.mxu0 %v912_v39 }
 0x25a   :  { %1845 = verf.f32 %v824_v23  ;;  %v2375_v24 = vadd.f32 %v2283_v1, %v731_v49  ;;  %1590 = vmatmul.mubr.f32.gmra.mrb[30].mxu0 %v913_v25  ;;  %v915_v21 = vmul.f32 %v883_v42, %v787_v50 }
 0x25b   :  { %v1836_v56 = vpop.eup %1835  ;;  %v827_v51 = vmul.f32 0.70710677, %v2371_v52  ;;  %v914_v57 = vmul.f32 %v882_v17, %v786_v60  ;;  %v795_v41 = vmul.f32 0.5, %v2371_v52 }
 0x25c   :  { %v1838_v3 = vpop.eup %1837  ;;  %v885_v37 = vadd.f32 1.0, %v1836_v56  ;;  %v826_v58 = vmul.f32 0.70710677, %v2375_v24  ;;  %v1529_v59 = vpop.f32.mrb[42].mxu1  ;;  %v794_v34 = vmul.f32 0.5, %v2375_v24 }
 0x25d   :  { %v884_v63 = vadd.f32 1.0, %v1838_v3  ;;  %1847 = verf.f32 %v827_v51  ;;  %v2381_v53 = vadd.f32 %v1529_v59, %v2283_v1  ;;  %v741_v38 = vpop.f32.mrb[43].mxu1  ;;  %1592 = vmatprep.mubr.f32.mxu0 %v914_v57 }
 0x25e   :  { %1849 = verf.f32 %v826_v58  ;;  %v742_v55 = vadd.f32 %v2283_v1, %v741_v38  ;;  %1593 = vmatmul.mubr.f32.gmra.mrb[32].mxu0 %v915_v21  ;;  %v917_v26 = vmul.f32 %v885_v37, %v789_v4 }
 0x25f   :  { %v1840_v43 = vpop.eup %1839  ;;  %v829_v9 = vmul.f32 0.70710677, %v2381_v53  ;;  %v916_v62 = vmul.f32 %v884_v63, %v788_v61  ;;  %v797_v17 = vmul.f32 0.5, %v2381_v53 }
 0x260   :  { %v1842_v44 = vpop.eup %1841  ;;  %v887_v10 = vadd.f32 1.0, %v1840_v43  ;;  %v828_v11 = vmul.f32 0.70710677, %v742_v55  ;;  %v1532_v12 = vpop.f32.mrb[44].mxu1  ;;  %v796_v25 = vmul.f32 0.5, %v742_v55 }
 0x261   :  { %v886_v7 = vadd.f32 1.0, %v1842_v44  ;;  %1851 = verf.f32 %v829_v9  ;;  %v757_v8 = vadd.f32 %v1532_v12, %v2283_v1  ;;  %v751_v40 = vpop.f32.mrb[45].mxu1  ;;  %1595 = vmatprep.mubr.f32.mxu0 %v916_v62  ;;  %v2400_v43 = vld [vmem:[%s2455_s6] ss:$0 sm:$0xff]  ;;  %s1987_s6 = smov [#allocation10]  }
 0x262   :  { %1853 = verf.f32 %v828_v11  ;;  %v752_v0 = vadd.f32 %v2283_v1, %v751_v40  ;;  %1596 = vmatmul.mubr.f32.gmra.mrb[34].mxu0 %v917_v26  ;;  %v919_v20 = vmul.f32 %v887_v10, %v791_v35  ;;  %s1215_s30 = sshll.u32 %s1987_s6, 4  ;;  %s1216_s30 = int_to_ptr.vmem [resolvable:$true] %s1215_s30 }
 0x263   :  { %v1844_v14 = vpop.eup %1843  ;;  %v831_v15 = vmul.f32 0.70710677, %v757_v8  ;;  %v918_v16 = vmul.f32 %v886_v7, %v790_v22  ;;  %v799_v3 = vmul.f32 0.5, %v757_v8  ;;  %s1951_s8 = scalar_lea.vmem %s1216_s30, 4096  ;;  %p1956_p5 = scmp.lt.s32.totalorder %s1216_s30, %s1216_s30 }
 0x264   :  { %v1846_v18 = vpop.eup %1845  ;;  %v889_v19 = vadd.f32 1.0, %v1844_v14  ;;  %v830_v47 = vmul.f32 0.70710677, %v752_v0  ;;  %v1535_v30 = vpop.f32.mrb[46].mxu1  ;;  %v798_v57 = vmul.f32 0.5, %v752_v0  ;;  %p1952_p4 = scmp.ne.s32.totalorder %s1216_s30, %s1951_s8  ;;  %p1957_p6 = scmp.lt.s32.totalorder %s1951_s8, %s1951_s8 }
 0x265   :  { %v888_v5 = vadd.f32 1.0, %v1846_v18  ;;  %1855 = verf.f32 %v831_v15  ;;  %v767_v28 = vadd.f32 %v1535_v30, %v2283_v1  ;;  %v761_v6 = vpop.f32.mrb[47].mxu1  ;;  %1598 = vmatprep.mubr.f32.mxu0 %v918_v16 }
 0x266   :  { %1857 = verf.f32 %v830_v47  ;;  %v762_v29 = vadd.f32 %v2283_v1, %v761_v6  ;;  %1599 = vmatmul.mubr.f32.gmra.mrb[36].mxu0 %v919_v20  ;;  %v921_v54 = vmul.f32 %v889_v19, %v793_v13  ;;  %p1958_p7 = por %p1957_p6, %p1956_p5 }
 0x267   :  { %v1848_v31 = vpop.eup %1847  ;;  %v833_v32 = vmul.f32 0.70710677, %v767_v28  ;;  %v920_v36 = vmul.f32 %v888_v5, %v792_v27  ;;  %v801_v53 = vmul.f32 0.5, %v767_v28 }
 0x268   :  { %v1850_v45 = vpop.eup %1849  ;;  %v891_v33 = vadd.f32 1.0, %v1848_v31  ;;  %v832_v2 = vmul.f32 0.70710677, %v762_v29  ;;  %v800_v63 = vmul.f32 0.5, %v762_v29  ;;  %p1959_p8 = pnand %p1958_p7, %p1952_p4 }
 0x269   :  { %v890_v39 = vadd.f32 1.0, %v1850_v45  ;;  %1859 = verf.f32 %v833_v32  ;;  %1601 = vmatprep.mubr.f32.mxu0 %v920_v36 }
 0x26a   :  { %1861 = verf.f32 %v832_v2  ;;  %1602 = vmatmul.mubr.f32.gmra.mrb[38].mxu0 %v921_v54  ;;  %v923_v48 = vmul.f32 %v891_v33, %v795_v41 }
 0x26b   :  { %v1852_v46 = vpop.eup %1851  ;;  %v922_v42 = vmul.f32 %v890_v39, %v794_v34 }
 0x26c   :  { %v1854_v1 = vpop.eup %1853  ;;  %v893_v23 = vadd.f32 1.0, %v1852_v46 }
 0x26d   :  { %v892_v60 = vadd.f32 1.0, %v1854_v1  ;;  %1604 = vmatprep.mubr.f32.mxu0 %v922_v42 }
 0x26e   :  { %1605 = vmatmul.mubr.f32.gmra.mrb[40].mxu0 %v923_v48  ;;  %v925_v51 = vmul.f32 %v893_v23, %v797_v17 }
 0x26f   :  { %v1856_v49 = vpop.eup %1855  ;;  %v924_v50 = vmul.f32 %v892_v60, %v796_v25 }
 0x270   :  { %v1858_v24 = vpop.eup %1857  ;;  %v895_v56 = vadd.f32 1.0, %v1856_v49 }
 0x271   :  { %v894_v52 = vadd.f32 1.0, %v1858_v24  ;;  %1607 = vmatprep.mubr.f32.mxu0 %v924_v50 }
 0x272   :  { %1608 = vmatmul.mubr.f32.gmra.mrb[42].mxu0 %v925_v51  ;;  %v927_v61 = vmul.f32 %v895_v56, %v799_v3 }
 0x273   :  { %v1860_v37 = vpop.eup %1859  ;;  %v926_v58 = vmul.f32 %v894_v52, %v798_v57 }
 0x274   :  { %v1862_v59 = vpop.eup %1861  ;;  %v897_v21 = vadd.f32 1.0, %v1860_v37 }
 0x275   :  { %v896_v38 = vadd.f32 1.0, %v1862_v59  ;;  %1610 = vmatprep.mubr.f32.mxu0 %v926_v58 }
 0x276   :  { %1611 = vmatmul.mubr.f32.gmra.mrb[44].mxu0 %v927_v61  ;;  %v929_v55 = vmul.f32 %v897_v21, %v801_v53 }
 0x277   :  { %v928_v4 = vmul.f32 %v896_v38, %v800_v63 }
 0x279   :  { %1613 = vmatprep.mubr.f32.mxu0 %v928_v4 }
 0x27a   :  { %1614 = vmatmul.mubr.f32.gmra.mrb[46].mxu0 %v929_v55 }
 0x311   :  { %v1570_v9 = vpop.f32.mrb[16].mxu0 }
 0x312   :  { %v1025_v62 = vadd.f32 %v1570_v9, %v2400_v43  ;;  %v1019_v44 = vpop.f32.mrb[17].mxu0 }
 0x313   :  { %v1020_v10 = vadd.f32 %v2400_v43, %v1019_v44 }
 0x314   :  { %1179 = vst [vmem:[#allocation10 + $0x8] sm:$0xff] %v1025_v62 }
 0x315   :  { %1178 = vst [vmem:[#allocation10] sm:$0xff] %v1020_v10  ;;  %v1573_v11 = vpop.f32.mrb[18].mxu0 }
 0x316   :  { %v1035_v12 = vadd.f32 %v1573_v11, %v2400_v43  ;;  %v1029_v26 = vpop.f32.mrb[19].mxu0 }
 0x317   :  { %v1030_v22 = vadd.f32 %v2400_v43, %v1029_v26 }
 0x318   :  { %1181 = vst [vmem:[#allocation10 + $0x18] sm:$0xff] %v1035_v12 }
 0x319   :  { %1180 = vst [vmem:[#allocation10 + $0x10] sm:$0xff] %v1030_v22  ;;  %v1576_v7 = vpop.f32.mrb[20].mxu0 }
 0x31a   :  { %v1045_v8 = vadd.f32 %v1576_v7, %v2400_v43  ;;  %v1039_v40 = vpop.f32.mrb[21].mxu0 }
 0x31b   :  { %v1040_v35 = vadd.f32 %v2400_v43, %v1039_v40 }
 0x31c   :  { %1183 = vst [vmem:[#allocation10 + $0x28] sm:$0xff] %v1045_v8 }
 0x31d   :  { %1182 = vst [vmem:[#allocation10 + $0x20] sm:$0xff] %v1040_v35  ;;  %v1579_v0 = vpop.f32.mrb[22].mxu0 }
 0x31e   :  { %v1055_v14 = vadd.f32 %v1579_v0, %v2400_v43  ;;  %v1049_v15 = vpop.f32.mrb[23].mxu0 }
 0x31f   :  { %v1050_v16 = vadd.f32 %v2400_v43, %v1049_v15 }
 0x320   :  { %1185 = vst [vmem:[#allocation10 + $0x38] sm:$0xff] %v1055_v14 }
 0x321   :  { %1184 = vst [vmem:[#allocation10 + $0x30] sm:$0xff] %v1050_v16  ;;  %v1582_v18 = vpop.f32.mrb[24].mxu0 }
 0x322   :  { %v1065_v19 = vadd.f32 %v1582_v18, %v2400_v43  ;;  %v1059_v47 = vpop.f32.mrb[25].mxu0 }
 0x323   :  { %v1060_v30 = vadd.f32 %v2400_v43, %v1059_v47 }
 0x324   :  { %1187 = vst [vmem:[#allocation10 + $0x48] sm:$0xff] %v1065_v19 }
 0x325   :  { %1186 = vst [vmem:[#allocation10 + $0x40] sm:$0xff] %v1060_v30  ;;  %v1585_v20 = vpop.f32.mrb[26].mxu0 }
 0x326   :  { %v1075_v27 = vadd.f32 %v1585_v20, %v2400_v43  ;;  %v1069_v5 = vpop.f32.mrb[27].mxu0 }
 0x327   :  { %v1070_v28 = vadd.f32 %v2400_v43, %v1069_v5 }
 0x328   :  { %1189 = vst [vmem:[#allocation10 + $0x58] sm:$0xff] %v1075_v27 }
 0x329   :  { %1188 = vst [vmem:[#allocation10 + $0x50] sm:$0xff] %v1070_v28  ;;  %v1588_v6 = vpop.f32.mrb[28].mxu0 }
 0x32a   :  { %v1085_v13 = vadd.f32 %v1588_v6, %v2400_v43  ;;  %v1079_v29 = vpop.f32.mrb[29].mxu0 }
 0x32b   :  { %v1080_v31 = vadd.f32 %v2400_v43, %v1079_v29 }
 0x32c   :  { %1191 = vst [vmem:[#allocation10 + $0x68] sm:$0xff] %v1085_v13 }
 0x32d   :  { %1190 = vst [vmem:[#allocation10 + $0x60] sm:$0xff] %v1080_v31  ;;  %v1591_v32 = vpop.f32.mrb[30].mxu0 }
 0x32e   :  { %v1095_v36 = vadd.f32 %v1591_v32, %v2400_v43  ;;  %v1089_v45 = vpop.f32.mrb[31].mxu0 }
 0x32f   :  { %v1090_v33 = vadd.f32 %v2400_v43, %v1089_v45 }
 0x330   :  { %1193 = vst [vmem:[#allocation10 + $0x78] sm:$0xff] %v1095_v36 }
 0x331   :  { %1192 = vst [vmem:[#allocation10 + $0x70] sm:$0xff] %v1090_v33  ;;  %v1594_v2 = vpop.f32.mrb[32].mxu0 }
 0x332   :  { %v1105_v54 = vadd.f32 %v1594_v2, %v2400_v43  ;;  %v1099_v34 = vpop.f32.mrb[33].mxu0 }
 0x333   :  { %v1100_v39 = vadd.f32 %v2400_v43, %v1099_v34 }
 0x334   :  { %1195 = vst [vmem:[#allocation10 + $0x88] sm:$0xff] %v1105_v54 }
 0x335   :  { %1194 = vst [vmem:[#allocation10 + $0x80] sm:$0xff] %v1100_v39  ;;  %v1597_v41 = vpop.f32.mrb[34].mxu0 }
 0x336   :  { %v1115_v46 = vadd.f32 %v1597_v41, %v2400_v43  ;;  %v1109_v42 = vpop.f32.mrb[35].mxu0 }
 0x337   :  { %v1110_v1 = vadd.f32 %v2400_v43, %v1109_v42 }
 0x338   :  { %1197 = vst [vmem:[#allocation10 + $0x98] sm:$0xff] %v1115_v46 }
 0x339   :  { %1196 = vst [vmem:[#allocation10 + $0x90] sm:$0xff] %v1110_v1  ;;  %v1600_v23 = vpop.f32.mrb[36].mxu0 }
 0x33a   :  { %v1125_v48 = vadd.f32 %v1600_v23, %v2400_v43  ;;  %v1119_v25 = vpop.f32.mrb[37].mxu0 }
 0x33b   :  { %v1120_v60 = vadd.f32 %v2400_v43, %v1119_v25 }
 0x33c   :  { %1199 = vst [vmem:[#allocation10 + $0xa8] sm:$0xff] %v1125_v48 }
 0x33d   :  { %1198 = vst [vmem:[#allocation10 + $0xa0] sm:$0xff] %v1120_v60  ;;  %v1603_v17 = vpop.f32.mrb[38].mxu0 }
 0x33e   :  { %v1135_v49 = vadd.f32 %v1603_v17, %v2400_v43  ;;  %v1129_v50 = vpop.f32.mrb[39].mxu0 }
 0x33f   :  { %v1130_v24 = vadd.f32 %v2400_v43, %v1129_v50 }
 0x340   :  { %1201 = vst [vmem:[#allocation10 + $0xb8] sm:$0xff] %v1135_v49 }
 0x341   :  { %1200 = vst [vmem:[#allocation10 + $0xb0] sm:$0xff] %v1130_v24  ;;  %v1606_v56 = vpop.f32.mrb[40].mxu0 }
 0x342   :  { %v1145_v51 = vadd.f32 %v1606_v56, %v2400_v43  ;;  %v1139_v57 = vpop.f32.mrb[41].mxu0 }
 0x343   :  { %v1140_v52 = vadd.f32 %v2400_v43, %v1139_v57 }
 0x344   :  { %1203 = vst [vmem:[#allocation10 + $0xc8] sm:$0xff] %v1145_v51 }
 0x345   :  { %1202 = vst [vmem:[#allocation10 + $0xc0] sm:$0xff] %v1140_v52  ;;  %v1609_v3 = vpop.f32.mrb[42].mxu0 }
 0x346   :  { %v1155_v37 = vadd.f32 %v1609_v3, %v2400_v43  ;;  %v1149_v58 = vpop.f32.mrb[43].mxu0 }
 0x347   :  { %v1150_v59 = vadd.f32 %v2400_v43, %v1149_v58 }
 0x348   :  { %1205 = vst [vmem:[#allocation10 + $0xd8] sm:$0xff] %v1155_v37 }
 0x349   :  { %1204 = vst [vmem:[#allocation10 + $0xd0] sm:$0xff] %v1150_v59  ;;  %v1612_v21 = vpop.f32.mrb[44].mxu0 }
 0x34a   :  { %v1165_v61 = vadd.f32 %v1612_v21, %v2400_v43  ;;  %v1159_v63 = vpop.f32.mrb[45].mxu0 }
 0x34b   :  { %v1160_v38 = vadd.f32 %v2400_v43, %v1159_v63 }
 0x34c   :  { %1207 = vst [vmem:[#allocation10 + $0xe8] sm:$0xff] %v1165_v61 }
 0x34d   :  { %1206 = vst [vmem:[#allocation10 + $0xe0] sm:$0xff] %v1160_v38  ;;  %v1615_v53 = vpop.f32.mrb[46].mxu0 }
 0x34e   :  { %v1175_v4 = vadd.f32 %v1615_v53, %v2400_v43  ;;  %v1169_v55 = vpop.f32.mrb[47].mxu0 }
 0x34f   :  { %v1170_v9 = vadd.f32 %v2400_v43, %v1169_v55 }
 0x350   :  { %1209 = vst [vmem:[#allocation10 + $0xf8] sm:$0xff] %v1175_v4 }
 0x351   :  { %1208 = vst [vmem:[#allocation10 + $0xf0] sm:$0xff] %v1170_v9 }
 0x352   :  { %1962 = shalt.err (!%p1959_p8)
}
 0x353   :  { %s1963_s11 = scalar_lea.hbm %s2456_s7, 4096 }
 0x354   :  { %p1964_p9 = scmp.ne.s32.totalorder %s2456_s7, %s1963_s11  ;;  %p1967_p10 = scmp.lt.u32.totalorder %s1963_s11, %s2456_s7 }
 0x356   :  { %p1969_p11 = pnand %p1967_p10, %p1964_p9 }
 0x358   :  { %1972 = shalt.err (!%p1969_p11)
}
 0x359   :  { %1221 = dma.vmem_to_hbm [thread:$0]  %s1216_s30, 4096, %s2456_s7, [#allocation4], %s1983_s13, %s1983_s13, %s1984_s14  }
 0x35a   :  { %1979 = dma.done.wait [#allocation4], 4096  }
 0x35b   :  { %1980 = vsyncadd [#allocation4], 4294963200 }
 0x35c   :  { %1225 = vsyncpa [#allocation3], 1 }
 0x35d   :  { %1226 = vsyncpa [#allocation6], 1 }
 0x35e   :  { %1227 = vsyncpa [#allocation9], 1 }
 0x35f   :  { %1228 = vsyncpa [#allocation4], 1 }

</bundles_post_ra>
